<compile_context>
chip_gen: v6e
topology: v6e:2x2x1
jax: 0.10.0
libtpu: 0.0.40
codegen_flags: <defaults>
</compile_context>

<pallas_src>
import functools
import math

import jax
import jax.numpy as jnp
from jax.experimental import pallas as pl
from jax.experimental.pallas import tpu as pltpu


# ----------------------------------------------------------------------------
# Generation-aware sizing helpers
# ----------------------------------------------------------------------------

@functools.lru_cache()
def _device_kind():
    try:
        return jax.devices()[0].device_kind.lower()
    except Exception:
        return ""


@functools.lru_cache()
def _tpu_vmem_bytes():
    try:
        cap = getattr(pltpu.get_tpu_info(), "vmem_capacity_bytes", None)
        if cap:
            return int(cap)
    except Exception:
        pass
    # Fallback from device kind: v7x has 64 MiB per TensorCore, older gens 128 MiB.
    if "v7" in _device_kind():
        return 64 * 1024 * 1024
    return 128 * 1024 * 1024


@functools.lru_cache()
def _vmem_limit():
    # Leave ~30% headroom for compiler-internal scratch / temporaries.
    return int(_tpu_vmem_bytes() * 0.7)


@functools.lru_cache()
def _linear_tile_defaults():
    # v6e (128 MiB VMEM, highest compute/BW ratio) benefits from 1024 output
    # tiles; v5e/v7x reach their ridge at 512 and v7x only has 64 MiB VMEM.
    if "v6" in _device_kind():
        return 1024, 1024, 1024
    return 512, 512, 1024


def _pick_tile(dim, target):
    """Largest power-of-two tile <= target that divides dim, else the full dim."""
    if dim <= target:
        return dim
    t = target
    while t >= 8:
        if dim % t == 0:
            return t
        t //= 2
    # TODO(synk): ragged dims (e.g. vocab=50257) fall back to a full-dim block;
    # pad such dims to a multiple of 256 for real checkpoints.
    return dim


# ----------------------------------------------------------------------------
# Tiled linear (+ optional GELU, + optional fused residual add)
# ----------------------------------------------------------------------------

def _linear_kernel(x_ref, w_ref, b_ref, *rest, activation, has_residual):
    if has_residual:
        r_ref, o_ref, acc_ref = rest
    else:
        o_ref, acc_ref = rest

    k = pl.program_id(2)

    @pl.when(k == 0)
    def _():
        acc_ref[...] = jnp.zeros_like(acc_ref)

    acc_ref[...] += jnp.dot(x_ref[...], w_ref[...],
                            preferred_element_type=jnp.float32)

    @pl.when(k == pl.num_programs(2) - 1)
    def _():
        acc = acc_ref[...] + b_ref[...].astype(jnp.float32)
        if activation == "gelu":
            # GLM / Megatron tanh-approximate GELU
            acc = 0.5 * acc * (
                1.0 + jnp.tanh(0.7978845608028654 * acc *
                               (1.0 + 0.044715 * acc * acc)))
        if has_residual:
            acc = acc + r_ref[...].astype(jnp.float32)
        o_ref[...] = acc.astype(o_ref.dtype)


def pallas_linear(x, w, b, *, activation=None, residual=None, out_dtype=None,
                  tm=None, tn=None, tk=None):
    """y = x @ w + b (opt. GELU, opt. + residual). x:[M,K] bf16, w:[K,N] bf16."""
    M, K = x.shape
    Kw, N = w.shape
    assert Kw == K
    out_dtype = out_dtype or x.dtype
    dtm, dtn, dtk = _linear_tile_defaults()
    tm = _pick_tile(M, tm or dtm)
    tn = _pick_tile(N, tn or dtn)
    tk = _pick_tile(K, tk or dtk)
    grid = (M // tm, N // tn, K // tk)

    in_specs = [
        pl.BlockSpec((tm, tk), lambda i, j, k: (i, k)),
        pl.BlockSpec((tk, tn), lambda i, j, k: (k, j)),
        pl.BlockSpec((1, tn), lambda i, j, k: (0, j)),
    ]
    inputs = [x, w, b.reshape(1, N)]
    if residual is not None:
        in_specs.append(pl.BlockSpec((tm, tn), lambda i, j, k: (i, j)))
        inputs.append(residual)

    return pl.pallas_call(
        functools.partial(_linear_kernel, activation=activation,
                          has_residual=residual is not None),
        out_shape=jax.ShapeDtypeStruct((M, N), out_dtype),
        grid=grid,
        in_specs=in_specs,
        out_specs=pl.BlockSpec((tm, tn), lambda i, j, k: (i, j)),
        scratch_shapes=[pltpu.VMEM((tm, tn), jnp.float32)],
        compiler_params=pltpu.CompilerParams(
            dimension_semantics=("parallel", "parallel", "arbitrary"),
            vmem_limit_bytes=_vmem_limit()),
    )(*inputs)


# ----------------------------------------------------------------------------
# Tied-embedding logits: hidden [M,H] @ emb[V,H]^T (contract last dims, no .T)
# ----------------------------------------------------------------------------

def _logits_kernel(x_ref, w_ref, o_ref, acc_ref):
    k = pl.program_id(2)

    @pl.when(k == 0)
    def _():
        acc_ref[...] = jnp.zeros_like(acc_ref)

    # Contract the K (last) dims of x [tm,tk] and emb [tn,tk]; no in-kernel
    # transpose of the embedding tile.
    acc_ref[...] += jax.lax.dot_general(
        x_ref[...], w_ref[...],
        dimension_numbers=(((1,), (1,)), ((), ())),
        preferred_element_type=jnp.float32)

    @pl.when(k == pl.num_programs(2) - 1)
    def _():
        o_ref[...] = acc_ref[...].astype(o_ref.dtype)


def pallas_tied_logits(x, emb, *, out_dtype=jnp.bfloat16, tm=None, tn=None, tk=None):
    M, K = x.shape
    V, Ke = emb.shape
    assert Ke == K
    dtm, dtn, dtk = _linear_tile_defaults()
    tm = _pick_tile(M, tm or dtm)
    tn = _pick_tile(V, tn or dtn)
    tk = _pick_tile(K, tk or dtk)
    grid = (M // tm, V // tn, K // tk)
    return pl.pallas_call(
        _logits_kernel,
        out_shape=jax.ShapeDtypeStruct((M, V), out_dtype),
        grid=grid,
        in_specs=[pl.BlockSpec((tm, tk), lambda i, j, k: (i, k)),
                  pl.BlockSpec((tn, tk), lambda i, j, k: (j, k))],
        out_specs=pl.BlockSpec((tm, tn), lambda i, j, k: (i, j)),
        scratch_shapes=[pltpu.VMEM((tm, tn), jnp.float32)],
        compiler_params=pltpu.CompilerParams(
            dimension_semantics=("parallel", "parallel", "arbitrary"),
            vmem_limit_bytes=_vmem_limit()),
    )(x, emb)


# ----------------------------------------------------------------------------
# Row-tiled LayerNorm (f32 statistics)
# ----------------------------------------------------------------------------

def _layernorm_kernel(x_ref, g_ref, b_ref, o_ref):
    x = x_ref[...].astype(jnp.float32)
    mu = jnp.mean(x, axis=-1, keepdims=True)
    var = jnp.mean(jnp.square(x - mu), axis=-1, keepdims=True)
    y = (x - mu) * jax.lax.rsqrt(var + 1e-5)
    o_ref[...] = (y * g_ref[...].astype(jnp.float32)
                  + b_ref[...].astype(jnp.float32)).astype(o_ref.dtype)


def pallas_layernorm(x, gamma, beta):
    M, H = x.shape
    # Derive the row tile from H so double-buffered in/out blocks + f32 temps
    # stay well inside the VMEM budget even at large hidden sizes (v7x: 64 MiB).
    budget = _vmem_limit() // 3
    tm = 8
    while tm * 2 * 12 * H <= budget and tm < 1024:
        tm *= 2
    tm = _pick_tile(M, tm)
    return pl.pallas_call(
        _layernorm_kernel,
        out_shape=jax.ShapeDtypeStruct((M, H), x.dtype),
        grid=(M // tm,),
        in_specs=[pl.BlockSpec((tm, H), lambda i: (i, 0)),
                  pl.BlockSpec((1, H), lambda i: (0, 0)),
                  pl.BlockSpec((1, H), lambda i: (0, 0))],
        out_specs=pl.BlockSpec((tm, H), lambda i: (i, 0)),
        compiler_params=pltpu.CompilerParams(
            dimension_semantics=("parallel",),
            vmem_limit_bytes=_vmem_limit()),
    )(x, gamma.reshape(1, H), beta.reshape(1, H))


# ----------------------------------------------------------------------------
# Flash-style attention (online softmax, per-batch bf16 mask, no transposes)
# ----------------------------------------------------------------------------

def _flash_attn_kernel(q_ref, k_ref, v_ref, msk_ref, o_ref,
                       m_scr, l_scr, acc_scr, *, scale, lead):
    ki = pl.program_id(3)
    idx = (0,) * lead

    @pl.when(ki == 0)
    def _():
        m_scr[...] = jnp.full_like(m_scr, -1e30)
        l_scr[...] = jnp.zeros_like(l_scr)
        acc_scr[...] = jnp.zeros_like(acc_scr)

    q = q_ref[idx]                                         # [tq, D] bf16
    k = k_ref[idx]                                         # [tkv, D] bf16
    # QK^T on the MXU without an in-kernel transpose: contract the last dims.
    s = jax.lax.dot_general(q, k, (((1,), (1,)), ((), ())),
                            preferred_element_type=jnp.float32) * scale
    mask = msk_ref[0].astype(jnp.float32)                  # [tq, tkv]
    # GLM masking convention: scores * mask - 10000 * (1 - mask), in f32.
    s = s * mask - 10000.0 * (1.0 - mask)
    # TODO(synk): with a structurally-known causal/prefix mask, guard the body
    # with pl.when to skip fully-masked kv tiles (~2x less attention compute).

    m_prev = m_scr[...]
    m_new = jnp.maximum(m_prev, jnp.max(s, axis=-1, keepdims=True))
    alpha = jnp.exp(m_prev - m_new)
    p = jnp.exp(s - m_new)
    l_scr[...] = alpha * l_scr[...] + jnp.sum(p, axis=-1, keepdims=True)
    acc_scr[...] = alpha * acc_scr[...] + jnp.dot(
        p.astype(v_ref.dtype), v_ref[idx], preferred_element_type=jnp.float32)
    m_scr[...] = m_new

    @pl.when(ki == pl.num_programs(3) - 1)
    def _():
        inv_l = pl.reciprocal(l_scr[...], approx=True)
        o_ref[idx] = (acc_scr[...] * inv_l).astype(o_ref.dtype)


def _attn_compiler_params():
    return pltpu.CompilerParams(
        dimension_semantics=("parallel", "parallel", "parallel", "arbitrary"),
        vmem_limit_bytes=_vmem_limit())


def pallas_flash_attention_bsh(qkv, mask, num_heads, head_dim, scale, *,
                               tq=512, tkv=512):
    """No-transpose path (head_dim % 128 == 0).

    qkv: [B, S, 3H] bf16 (fused Q|K|V), mask: [B, S, S] bf16 -> ctx [B, S, H] bf16.
    Heads are selected as lane-aligned column blocks of the fused QKV
    activation directly in the BlockSpecs, so no head split/merge transposes
    and no qkv split copy ever touch HBM.
    """
    B, S, H3 = qkv.shape
    H = H3 // 3
    D = head_dim
    NH = num_heads
    tq = _pick_tile(S, tq)
    tkv = _pick_tile(S, tkv)
    grid = (B, NH, S // tq, S // tkv)

    return pl.pallas_call(
        functools.partial(_flash_attn_kernel, scale=scale, lead=1),
        out_shape=jax.ShapeDtypeStruct((B, S, H), qkv.dtype),
        grid=grid,
        in_specs=[
            pl.BlockSpec((1, tq, D), lambda b, h, qi, ki: (b, qi, h)),
            pl.BlockSpec((1, tkv, D), lambda b, h, qi, ki: (b, ki, NH + h)),
            pl.BlockSpec((1, tkv, D), lambda b, h, qi, ki: (b, ki, 2 * NH + h)),
            pl.BlockSpec((1, tq, tkv), lambda b, h, qi, ki: (b, qi, ki)),
        ],
        out_specs=pl.BlockSpec((1, tq, D), lambda b, h, qi, ki: (b, qi, h)),
        scratch_shapes=[pltpu.VMEM((tq, 1), jnp.float32),
                        pltpu.VMEM((tq, 1), jnp.float32),
                        pltpu.VMEM((tq, D), jnp.float32)],
        compiler_params=_attn_compiler_params(),
    )(qkv, qkv, qkv, mask)


def pallas_flash_attention_nhd(q, k, v, mask, scale, *, tq=512, tkv=512):
    """Fallback path for head_dim not lane-aligned. q,k,v: [B,NH,S,D] bf16."""
    B, NH, S, D = q.shape
    tq = _pick_tile(S, tq)
    tkv = _pick_tile(S, tkv)
    grid = (B, NH, S // tq, S // tkv)
    return pl.pallas_call(
        functools.partial(_flash_attn_kernel, scale=scale, lead=2),
        out_shape=jax.ShapeDtypeStruct((B, NH, S, D), q.dtype),
        grid=grid,
        in_specs=[
            pl.BlockSpec((1, 1, tq, D), lambda b, h, qi, ki: (b, h, qi, 0)),
            pl.BlockSpec((1, 1, tkv, D), lambda b, h, qi, ki: (b, h, ki, 0)),
            pl.BlockSpec((1, 1, tkv, D), lambda b, h, qi, ki: (b, h, ki, 0)),
            pl.BlockSpec((1, tq, tkv), lambda b, h, qi, ki: (b, qi, ki)),
        ],
        out_specs=pl.BlockSpec((1, 1, tq, D), lambda b, h, qi, ki: (b, h, qi, 0)),
        scratch_shapes=[pltpu.VMEM((tq, 1), jnp.float32),
                        pltpu.VMEM((tq, 1), jnp.float32),
                        pltpu.VMEM((tq, D), jnp.float32)],
        compiler_params=_attn_compiler_params(),
    )(q, k, v, mask)


# ----------------------------------------------------------------------------
# GLM model (glue in plain JAX, hot paths in Pallas)
# ----------------------------------------------------------------------------

def init_glm_params(key, num_layers, vocab_size, hidden_size, max_sequence_length):
    H = hidden_size
    keys = jax.random.split(key, 2 + 4 * num_layers)
    kit = iter(keys)

    def normal(k, shape, std=0.02):
        return (std * jax.random.normal(k, shape, dtype=jnp.float32)).astype(jnp.bfloat16)

    params = {
        "word_embeddings": normal(next(kit), (vocab_size, H)),       # init_method_normal(0.02)
        "position_embeddings": normal(next(kit), (max_sequence_length, H)),
        "final_ln_g": jnp.ones((H,), jnp.float32),
        "final_ln_b": jnp.zeros((H,), jnp.float32),
    }
    out_std = 0.02 / math.sqrt(2.0 * num_layers)   # Megatron scaled-init for output layers
    layers = []
    for _ in range(num_layers):
        layers.append({
            "ln1_g": jnp.ones((H,), jnp.float32),
            "ln1_b": jnp.zeros((H,), jnp.float32),
            # weights stored as [in, out] bf16 so kernels compute x @ w
            "qkv_w": normal(next(kit), (H, 3 * H)),
            "qkv_b": jnp.zeros((3 * H,), jnp.float32),
            "attn_dense_w": normal(next(kit), (H, H), std=out_std),
            "attn_dense_b": jnp.zeros((H,), jnp.float32),
            "ln2_g": jnp.ones((H,), jnp.float32),
            "ln2_b": jnp.zeros((H,), jnp.float32),
            "mlp_h_to_4h_w": normal(next(kit), (H, 4 * H)),
            "mlp_h_to_4h_b": jnp.zeros((4 * H,), jnp.float32),
            "mlp_4h_to_h_w": normal(next(kit), (4 * H, H), std=out_std),
            "mlp_4h_to_h_b": jnp.zeros((H,), jnp.float32),
        })
    params["layers"] = layers
    return params


def _prepare_mask(attention_mask, B, S):
    """Normalize GLM attention masks to a [B, S, S] bf16 tensor (1=attend)."""
    m = jnp.asarray(attention_mask, jnp.float32)
    if m.ndim == 4:
        m = m[:, 0]
    elif m.ndim == 2:
        m = m[None]
    # TODO(synk): GLM's generation-time scalar "sep" mask is not handled here.
    return jnp.broadcast_to(m, (B, S, S)).astype(jnp.bfloat16)


def glm_layer(x2, lp, mask, B, S, H, num_heads):
    D = H // num_heads
    scale = 1.0 / math.sqrt(D)

    # --- self attention ---
    ln1 = pallas_layernorm(x2, lp["ln1_g"], lp["ln1_b"])
    qkv = pallas_linear(ln1, lp["qkv_w"], lp["qkv_b"])                # [B*S, 3H] bf16

    if D % 128 == 0:
        # Zero-transpose path: heads selected as column blocks inside attention.
        ctx = pallas_flash_attention_bsh(qkv.reshape(B, S, 3 * H), mask,
                                         num_heads, D, scale)
        ctx = ctx.reshape(B * S, H)
    else:
        # Fallback for small / unaligned head_dim (demo sizes).
        q, k, v = jnp.split(qkv.reshape(B, S, 3 * H), 3, axis=-1)

        def heads(t):
            return t.reshape(B, S, num_heads, D).transpose(0, 2, 1, 3)  # [B,NH,S,D]

        ctx = pallas_flash_attention_nhd(heads(q), heads(k), heads(v), mask, scale)
        ctx = ctx.transpose(0, 2, 1, 3).reshape(B * S, H)

    # attention output projection with fused residual add (dropout = 0)
    x2 = pallas_linear(ctx, lp["attn_dense_w"], lp["attn_dense_b"], residual=x2)

    # --- MLP ---
    ln2 = pallas_layernorm(x2, lp["ln2_g"], lp["ln2_b"])
    h4 = pallas_linear(ln2, lp["mlp_h_to_4h_w"], lp["mlp_h_to_4h_b"], activation="gelu")
    x2 = pallas_linear(h4, lp["mlp_4h_to_h_w"], lp["mlp_4h_to_h_b"], residual=x2)
    return x2


def glm_forward(params, input_ids, position_ids, attention_mask, num_heads):
    """Returns logits_parallel [B, S, vocab]  (parallel_output=True path)."""
    B, S = input_ids.shape
    vocab, H = params["word_embeddings"].shape

    # Embedding lookups (glue; gather has no meaningful Pallas hot path here)
    words = jnp.take(params["word_embeddings"], input_ids, axis=0)
    pos = jnp.take(params["position_embeddings"], position_ids, axis=0)
    hidden = (words.astype(jnp.float32) + pos.astype(jnp.float32)).astype(jnp.bfloat16)
    hidden = hidden.reshape(B * S, H)                                  # embedding dropout = 0

    mask = _prepare_mask(attention_mask, B, S)                         # [B,S,S] bf16
    for lp in params["layers"]:
        hidden = glm_layer(hidden, lp, mask, B, S, H, num_heads)

    hidden = pallas_layernorm(hidden, params["final_ln_g"], params["final_ln_b"])

    # output_predict: logits = F.linear(hidden, word_embeddings.weight)
    logits = pallas_tied_logits(hidden, params["word_embeddings"])
    # TODO(synk): memory (mems) caching / return_memory path and PromptSpell not implemented.
    return logits.reshape(B, S, vocab)


# ----------------------------------------------------------------------------
# Demo
# ----------------------------------------------------------------------------

if __name__ == "__main__":
    def run_demo(num_layers, vocab_size, hidden_size, num_heads, max_seq, batch, seq):
        key = jax.random.PRNGKey(0)
        kp, kids = jax.random.split(key)
        params = init_glm_params(kp, num_layers, vocab_size, hidden_size, max_seq)

        input_ids = jax.random.randint(kids, (batch, seq), 0, vocab_size, dtype=jnp.int32)
        position_ids = jnp.broadcast_to(jnp.arange(seq, dtype=jnp.int32)[None, :],
                                        (batch, seq))
        # causal left-to-right mask: 1 = attend, 0 = masked  (shape [B, 1, S, S])
        causal = jnp.tril(jnp.ones((seq, seq), jnp.float32))
        attention_mask = jnp.broadcast_to(causal[None, None, :, :],
                                          (batch, 1, seq, seq))

        fwd = jax.jit(functools.partial(glm_forward, num_heads=num_heads))
        logits = fwd(params, input_ids, position_ids, attention_mask)
        jax.block_until_ready(logits)
        assert logits.shape == (batch, seq, vocab_size)
        assert bool(jnp.all(jnp.isfinite(logits.astype(jnp.float32))))

    # Small demo (head_dim=8 -> transposed fallback attention path).
    run_demo(num_layers=2, vocab_size=64, hidden_size=32, num_heads=4,
             max_seq=16, batch=2, seq=8)
    # Exercise the zero-transpose attention path (head_dim=128, lane-aligned).
    run_demo(num_layers=1, vocab_size=64, hidden_size=256, num_heads=2,
             max_seq=16, batch=1, seq=8)
    print("KERNEL_OK")
</pallas_src>

<mosaic_0001>
module attributes {stable_mosaic.version = 11 : i64} {
  func.func @_layernorm_kernel(%arg0: i32, %arg1: memref<16x32xbf16, #tpu.memory_space<vmem>>, %arg2: memref<1x32xf32, #tpu.memory_space<vmem>>, %arg3: memref<1x32xf32, #tpu.memory_space<vmem>>, %arg4: memref<16x32xbf16, #tpu.memory_space<vmem>>) attributes {dimension_semantics = [#tpu.dimension_semantics<parallel>], iteration_bounds = array<i64: 1>, scalar_prefetch = 0 : i64, scratch_operands = 0 : i64, tpu.core_type = #tpu.core_type<tc>, window_params = [{transform_indices = @transform_0, window_bounds = array<i64: 16, 32>}, {pipeline_mode = #tpu.pipeline_mode<synchronous>, transform_indices = @transform_1, window_bounds = array<i64: 1, 32>}, {pipeline_mode = #tpu.pipeline_mode<synchronous>, transform_indices = @transform_2, window_bounds = array<i64: 1, 32>}, {transform_indices = @transform_3, window_bounds = array<i64: 16, 32>}]} {
    %c0 = arith.constant 0 : index
    %c0_0 = arith.constant 0 : index
    %0 = vector.load %arg1[%c0, %c0_0] : memref<16x32xbf16, #tpu.memory_space<vmem>>, vector<16x32xbf16>
    %1 = arith.extf %0 : vector<16x32xbf16> to vector<16x32xf32>
    %cst = arith.constant dense<0.000000e+00> : vector<16xf32>
    %2 = vector.multi_reduction <add>, %1, %cst [1] : vector<16x32xf32> to vector<16xf32>
    %3 = vector.shape_cast %2 : vector<16xf32> to vector<16x1xf32>
    %cst_1 = arith.constant 3.200000e+01 : f32
    %4 = vector.broadcast %cst_1 : f32 to vector<16x1xf32>
    %5 = arith.divf %3, %4 : vector<16x1xf32>
    %6 = vector.broadcast %5 : vector<16x1xf32> to vector<16x32xf32>
    %7 = arith.subf %1, %6 : vector<16x32xf32>
    %8 = arith.mulf %7, %7 : vector<16x32xf32>
    %cst_2 = arith.constant dense<0.000000e+00> : vector<16xf32>
    %9 = vector.multi_reduction <add>, %8, %cst_2 [1] : vector<16x32xf32> to vector<16xf32>
    %10 = vector.shape_cast %9 : vector<16xf32> to vector<16x1xf32>
    %cst_3 = arith.constant 3.200000e+01 : f32
    %11 = vector.broadcast %cst_3 : f32 to vector<16x1xf32>
    %12 = arith.divf %10, %11 : vector<16x1xf32>
    %13 = vector.broadcast %5 : vector<16x1xf32> to vector<16x32xf32>
    %14 = arith.subf %1, %13 : vector<16x32xf32>
    %cst_4 = arith.constant 9.99999974E-6 : f32
    %15 = vector.broadcast %cst_4 : f32 to vector<16x1xf32>
    %16 = arith.addf %12, %15 : vector<16x1xf32>
    %17 = math.rsqrt %16 : vector<16x1xf32>
    %18 = vector.broadcast %17 : vector<16x1xf32> to vector<16x32xf32>
    %19 = arith.mulf %14, %18 : vector<16x32xf32>
    %c0_5 = arith.constant 0 : index
    %c0_6 = arith.constant 0 : index
    %20 = vector.load %arg2[%c0_5, %c0_6] : memref<1x32xf32, #tpu.memory_space<vmem>>, vector<1x32xf32>
    %21 = vector.broadcast %20 : vector<1x32xf32> to vector<16x32xf32>
    %22 = arith.mulf %19, %21 : vector<16x32xf32>
    %c0_7 = arith.constant 0 : index
    %c0_8 = arith.constant 0 : index
    %23 = vector.load %arg3[%c0_7, %c0_8] : memref<1x32xf32, #tpu.memory_space<vmem>>, vector<1x32xf32>
    %24 = vector.broadcast %23 : vector<1x32xf32> to vector<16x32xf32>
    %25 = arith.addf %22, %24 : vector<16x32xf32>
    %26 = arith.truncf %25 : vector<16x32xf32> to vector<16x32xbf16>
    %c0_9 = arith.constant 0 : index
    %c0_10 = arith.constant 0 : index
    %27 = vector.load %arg4[%c0_9, %c0_10] : memref<16x32xbf16, #tpu.memory_space<vmem>>, vector<16x32xbf16>
    tpu.vector_store %arg4[%c0_9, %c0_10], %26 {strides = array<i32>} : memref<16x32xbf16, #tpu.memory_space<vmem>>, vector<16x32xbf16>,
    return
  }
  func.func @transform_0(%arg0: i32) -> (i32, i32) {
    %c0_i32 = arith.constant 0 : i32
    %c0_i32_0 = arith.constant 0 : i32
    return %arg0, %c0_i32 : i32, i32
  }
  func.func @transform_1(%arg0: i32) -> (i32, i32) {
    %c0_i32 = arith.constant 0 : i32
    %c0_i32_0 = arith.constant 0 : i32
    %c0_i32_1 = arith.constant 0 : i32
    return %c0_i32, %c0_i32_0 : i32, i32
  }
  func.func @transform_2(%arg0: i32) -> (i32, i32) {
    %c0_i32 = arith.constant 0 : i32
    %c0_i32_0 = arith.constant 0 : i32
    %c0_i32_1 = arith.constant 0 : i32
    return %c0_i32, %c0_i32_0 : i32, i32
  }
  func.func @transform_3(%arg0: i32) -> (i32, i32) {
    %c0_i32 = arith.constant 0 : i32
    %c0_i32_0 = arith.constant 0 : i32
    return %arg0, %c0_i32 : i32, i32
  }
}

module attributes {stable_mosaic.version = 11 : i64} {
  func.func @_linear_kernel(%arg0: i32, %arg1: i32, %arg2: i32, %arg3: memref<16x32xbf16, #tpu.memory_space<vmem>>, %arg4: memref<32x96xbf16, #tpu.memory_space<vmem>>, %arg5: memref<1x96xf32, #tpu.memory_space<vmem>>, %arg6: memref<16x96xbf16, #tpu.memory_space<vmem>>, %arg7: memref<16x96xf32, #tpu.memory_space<vmem>>) attributes {dimension_semantics = [#tpu.dimension_semantics<parallel>, #tpu.dimension_semantics<parallel>, #tpu.dimension_semantics<arbitrary>], iteration_bounds = array<i64: 1, 1, 1>, scalar_prefetch = 0 : i64, scratch_operands = 1 : i64, tpu.core_type = #tpu.core_type<tc>, window_params = [{transform_indices = @transform_0, window_bounds = array<i64: 16, 32>}, {transform_indices = @transform_1, window_bounds = array<i64: 32, 96>}, {transform_indices = @transform_2, window_bounds = array<i64: 1, 96>}, {transform_indices = @transform_3, window_bounds = array<i64: 16, 96>}]} {
    %c0_i32 = arith.constant 0 : i32
    %0 = arith.cmpi eq, %arg2, %c0_i32 : i32
    %1 = arith.extui %0 : i1 to i32
    %c0_i32_0 = arith.constant 0 : i32
    %2 = arith.cmpi ne, %1, %c0_i32_0 : i32
    scf.if %2 {
      %cst_10 = arith.constant 0.000000e+00 : f32
      %12 = vector.broadcast %cst_10 : f32 to vector<16x96xf32>
      %c0_11 = arith.constant 0 : index
      %c0_12 = arith.constant 0 : index
      %13 = vector.load %arg7[%c0_11, %c0_12] : memref<16x96xf32, #tpu.memory_space<vmem>>, vector<16x96xf32>
      tpu.vector_store %arg7[%c0_11, %c0_12], %12 {strides = array<i32>} : memref<16x96xf32, #tpu.memory_space<vmem>>, vector<16x96xf32>,
    } else {
    }
    %c0 = arith.constant 0 : index
    %c0_1 = arith.constant 0 : index
    %3 = vector.load %arg7[%c0, %c0_1] : memref<16x96xf32, #tpu.memory_space<vmem>>, vector<16x96xf32>
    %c0_2 = arith.constant 0 : index
    %c0_3 = arith.constant 0 : index
    %4 = vector.load %arg3[%c0_2, %c0_3] : memref<16x32xbf16, #tpu.memory_space<vmem>>, vector<16x32xbf16>
    %c0_4 = arith.constant 0 : index
    %c0_5 = arith.constant 0 : index
    %5 = vector.load %arg4[%c0_4, %c0_5] : memref<32x96xbf16, #tpu.memory_space<vmem>>, vector<32x96xbf16>
    %cst = arith.constant dense<0.000000e+00> : vector<16x96xf32>
    %6 = tpu.matmul %4, %5, %cst {dimension_numbers = #tpu.dot_dimension_numbers<[1], [0], [0], [1], [0, 0, 1, 1], [], []>} : vector<16x32xbf16>, vector<32x96xbf16>, vector<16x96xf32> -> vector<16x96xf32>
    %7 = arith.addf %3, %6 : vector<16x96xf32>
    %c0_6 = arith.constant 0 : index
    %c0_7 = arith.constant 0 : index
    %8 = vector.load %arg7[%c0_6, %c0_7] : memref<16x96xf32, #tpu.memory_space<vmem>>, vector<16x96xf32>
    tpu.vector_store %arg7[%c0_6, %c0_7], %7 {strides = array<i32>} : memref<16x96xf32, #tpu.memory_space<vmem>>, vector<16x96xf32>,
    %c0_i32_8 = arith.constant 0 : i32
    %9 = arith.cmpi eq, %arg2, %c0_i32_8 : i32
    %10 = arith.extui %9 : i1 to i32
    %c0_i32_9 = arith.constant 0 : i32
    %11 = arith.cmpi ne, %10, %c0_i32_9 : i32
    scf.if %11 {
      %c0_10 = arith.constant 0 : index
      %c0_11 = arith.constant 0 : index
      %12 = vector.load %arg7[%c0_10, %c0_11] : memref<16x96xf32, #tpu.memory_space<vmem>>, vector<16x96xf32>
      %c0_12 = arith.constant 0 : index
      %c0_13 = arith.constant 0 : index
      %13 = vector.load %arg5[%c0_12, %c0_13] : memref<1x96xf32, #tpu.memory_space<vmem>>, vector<1x96xf32>
      %14 = vector.broadcast %13 : vector<1x96xf32> to vector<16x96xf32>
      %15 = arith.addf %12, %14 : vector<16x96xf32>
      %16 = arith.truncf %15 : vector<16x96xf32> to vector<16x96xbf16>
      %c0_14 = arith.constant 0 : index
      %c0_15 = arith.constant 0 : index
      %17 = vector.load %arg6[%c0_14, %c0_15] : memref<16x96xbf16, #tpu.memory_space<vmem>>, vector<16x96xbf16>
      tpu.vector_store %arg6[%c0_14, %c0_15], %16 {strides = array<i32>} : memref<16x96xbf16, #tpu.memory_space<vmem>>, vector<16x96xbf16>,
    } else {
    }
    return
  }
  func.func @transform_0(%arg0: i32, %arg1: i32, %arg2: i32) -> (i32, i32) {
    %c0_i32 = arith.constant 0 : i32
    return %arg0, %arg2 : i32, i32
  }
  func.func @transform_1(%arg0: i32, %arg1: i32, %arg2: i32) -> (i32, i32) {
    %c0_i32 = arith.constant 0 : i32
    return %arg2, %arg1 : i32, i32
  }
  func.func @transform_2(%arg0: i32, %arg1: i32, %arg2: i32) -> (i32, i32) {
    %c0_i32 = arith.constant 0 : i32
    %c0_i32_0 = arith.constant 0 : i32
    return %c0_i32, %arg1 : i32, i32
  }
  func.func @transform_3(%arg0: i32, %arg1: i32, %arg2: i32) -> (i32, i32) {
    %c0_i32 = arith.constant 0 : i32
    return %arg0, %arg1 : i32, i32
  }
}

module attributes {stable_mosaic.version = 11 : i64} {
  func.func @_linear_kernel(%arg0: i32, %arg1: i32, %arg2: i32, %arg3: memref<16x32xbf16, #tpu.memory_space<vmem>>, %arg4: memref<32x32xbf16, #tpu.memory_space<vmem>>, %arg5: memref<1x32xf32, #tpu.memory_space<vmem>>, %arg6: memref<16x32xbf16, #tpu.memory_space<vmem>>, %arg7: memref<16x32xbf16, #tpu.memory_space<vmem>>, %arg8: memref<16x32xf32, #tpu.memory_space<vmem>>) attributes {dimension_semantics = [#tpu.dimension_semantics<parallel>, #tpu.dimension_semantics<parallel>, #tpu.dimension_semantics<arbitrary>], iteration_bounds = array<i64: 1, 1, 1>, scalar_prefetch = 0 : i64, scratch_operands = 1 : i64, tpu.core_type = #tpu.core_type<tc>, window_params = [{transform_indices = @transform_0, window_bounds = array<i64: 16, 32>}, {transform_indices = @transform_1, window_bounds = array<i64: 32, 32>}, {transform_indices = @transform_2, window_bounds = array<i64: 1, 32>}, {transform_indices = @transform_3, window_bounds = array<i64: 16, 32>}, {transform_indices = @transform_4, window_bounds = array<i64: 16, 32>}]} {
    %c0_i32 = arith.constant 0 : i32
    %0 = arith.cmpi eq, %arg2, %c0_i32 : i32
    %1 = arith.extui %0 : i1 to i32
    %c0_i32_0 = arith.constant 0 : i32
    %2 = arith.cmpi ne, %1, %c0_i32_0 : i32
    scf.if %2 {
      %cst_10 = arith.constant 0.000000e+00 : f32
      %12 = vector.broadcast %cst_10 : f32 to vector<16x32xf32>
      %c0_11 = arith.constant 0 : index
      %c0_12 = arith.constant 0 : index
      %13 = vector.load %arg8[%c0_11, %c0_12] : memref<16x32xf32, #tpu.memory_space<vmem>>, vector<16x32xf32>
      tpu.vector_store %arg8[%c0_11, %c0_12], %12 {strides = array<i32>} : memref<16x32xf32, #tpu.memory_space<vmem>>, vector<16x32xf32>,
    } else {
    }
    %c0 = arith.constant 0 : index
    %c0_1 = arith.constant 0 : index
    %3 = vector.load %arg8[%c0, %c0_1] : memref<16x32xf32, #tpu.memory_space<vmem>>, vector<16x32xf32>
    %c0_2 = arith.constant 0 : index
    %c0_3 = arith.constant 0 : index
    %4 = vector.load %arg3[%c0_2, %c0_3] : memref<16x32xbf16, #tpu.memory_space<vmem>>, vector<16x32xbf16>
    %c0_4 = arith.constant 0 : index
    %c0_5 = arith.constant 0 : index
    %5 = vector.load %arg4[%c0_4, %c0_5] : memref<32x32xbf16, #tpu.memory_space<vmem>>, vector<32x32xbf16>
    %cst = arith.constant dense<0.000000e+00> : vector<16x32xf32>
    %6 = tpu.matmul %4, %5, %cst {dimension_numbers = #tpu.dot_dimension_numbers<[1], [0], [0], [1], [0, 0, 1, 1], [], []>} : vector<16x32xbf16>, vector<32x32xbf16>, vector<16x32xf32> -> vector<16x32xf32>
    %7 = arith.addf %3, %6 : vector<16x32xf32>
    %c0_6 = arith.constant 0 : index
    %c0_7 = arith.constant 0 : index
    %8 = vector.load %arg8[%c0_6, %c0_7] : memref<16x32xf32, #tpu.memory_space<vmem>>, vector<16x32xf32>
    tpu.vector_store %arg8[%c0_6, %c0_7], %7 {strides = array<i32>} : memref<16x32xf32, #tpu.memory_space<vmem>>, vector<16x32xf32>,
    %c0_i32_8 = arith.constant 0 : i32
    %9 = arith.cmpi eq, %arg2, %c0_i32_8 : i32
    %10 = arith.extui %9 : i1 to i32
    %c0_i32_9 = arith.constant 0 : i32
    %11 = arith.cmpi ne, %10, %c0_i32_9 : i32
    scf.if %11 {
      %c0_10 = arith.constant 0 : index
      %c0_11 = arith.constant 0 : index
      %12 = vector.load %arg8[%c0_10, %c0_11] : memref<16x32xf32, #tpu.memory_space<vmem>>, vector<16x32xf32>
      %c0_12 = arith.constant 0 : index
      %c0_13 = arith.constant 0 : index
      %13 = vector.load %arg5[%c0_12, %c0_13] : memref<1x32xf32, #tpu.memory_space<vmem>>, vector<1x32xf32>
      %14 = vector.broadcast %13 : vector<1x32xf32> to vector<16x32xf32>
      %15 = arith.addf %12, %14 : vector<16x32xf32>
      %c0_14 = arith.constant 0 : index
      %c0_15 = arith.constant 0 : index
      %16 = vector.load %arg6[%c0_14, %c0_15] : memref<16x32xbf16, #tpu.memory_space<vmem>>, vector<16x32xbf16>
      %17 = arith.extf %16 : vector<16x32xbf16> to vector<16x32xf32>
      %18 = arith.addf %15, %17 : vector<16x32xf32>
      %19 = arith.truncf %18 : vector<16x32xf32> to vector<16x32xbf16>
      %c0_16 = arith.constant 0 : index
      %c0_17 = arith.constant 0 : index
      %20 = vector.load %arg7[%c0_16, %c0_17] : memref<16x32xbf16, #tpu.memory_space<vmem>>, vector<16x32xbf16>
      tpu.vector_store %arg7[%c0_16, %c0_17], %19 {strides = array<i32>} : memref<16x32xbf16, #tpu.memory_space<vmem>>, vector<16x32xbf16>,
    } else {
    }
    return
  }
  func.func @transform_0(%arg0: i32, %arg1: i32, %arg2: i32) -> (i32, i32) {
    %c0_i32 = arith.constant 0 : i32
    return %arg0, %arg2 : i32, i32
  }
  func.func @transform_1(%arg0: i32, %arg1: i32, %arg2: i32) -> (i32, i32) {
    %c0_i32 = arith.constant 0 : i32
    return %arg2, %arg1 : i32, i32
  }
  func.func @transform_2(%arg0: i32, %arg1: i32, %arg2: i32) -> (i32, i32) {
    %c0_i32 = arith.constant 0 : i32
    %c0_i32_0 = arith.constant 0 : i32
    return %c0_i32, %arg1 : i32, i32
  }
  func.func @transform_3(%arg0: i32, %arg1: i32, %arg2: i32) -> (i32, i32) {
    %c0_i32 = arith.constant 0 : i32
    return %arg0, %arg1 : i32, i32
  }
  func.func @transform_4(%arg0: i32, %arg1: i32, %arg2: i32) -> (i32, i32) {
    %c0_i32 = arith.constant 0 : i32
    return %arg0, %arg1 : i32, i32
  }
}

module attributes {stable_mosaic.version = 11 : i64} {
  func.func @_flash_attn_kernel(%arg0: i32, %arg1: i32, %arg2: i32, %arg3: i32, %arg4: memref<1x1x8x8xbf16, #tpu.memory_space<vmem>>, %arg5: memref<1x1x8x8xbf16, #tpu.memory_space<vmem>>, %arg6: memref<1x1x8x8xbf16, #tpu.memory_space<vmem>>, %arg7: memref<1x8x8xbf16, #tpu.memory_space<vmem>>, %arg8: memref<1x1x8x8xbf16, #tpu.memory_space<vmem>>, %arg9: memref<8x1xf32, #tpu.memory_space<vmem>>, %arg10: memref<8x1xf32, #tpu.memory_space<vmem>>, %arg11: memref<8x8xf32, #tpu.memory_space<vmem>>) attributes {dimension_semantics = [#tpu.dimension_semantics<parallel>, #tpu.dimension_semantics<parallel>, #tpu.dimension_semantics<parallel>, #tpu.dimension_semantics<arbitrary>], iteration_bounds = array<i64: 2, 4, 1, 1>, scalar_prefetch = 0 : i64, scratch_operands = 3 : i64, tpu.core_type = #tpu.core_type<tc>, window_params = [{transform_indices = @transform_0, window_bounds = array<i64: 1, 1, 8, 8>}, {transform_indices = @transform_1, window_bounds = array<i64: 1, 1, 8, 8>}, {transform_indices = @transform_2, window_bounds = array<i64: 1, 1, 8, 8>}, {transform_indices = @transform_3, window_bounds = array<i64: 1, 8, 8>}, {transform_indices = @transform_4, window_bounds = array<i64: 1, 1, 8, 8>}]} {
    %c0_i32 = arith.constant 0 : i32
    %0 = arith.cmpi eq, %arg3, %c0_i32 : i32
    %1 = arith.extui %0 : i1 to i32
    %c0_i32_0 = arith.constant 0 : i32
    %2 = arith.cmpi ne, %1, %c0_i32_0 : i32
    scf.if %2 {
      %cst_35 = arith.constant -1.000000e+30 : f32
      %47 = vector.broadcast %cst_35 : f32 to vector<8x1xf32>
      %c0_36 = arith.constant 0 : index
      %c0_37 = arith.constant 0 : index
      %48 = vector.load %arg9[%c0_36, %c0_37] : memref<8x1xf32, #tpu.memory_space<vmem>>, vector<8x1xf32>
      tpu.vector_store %arg9[%c0_36, %c0_37], %47 {strides = array<i32>} : memref<8x1xf32, #tpu.memory_space<vmem>>, vector<8x1xf32>,
      %cst_38 = arith.constant 0.000000e+00 : f32
      %49 = vector.broadcast %cst_38 : f32 to vector<8x1xf32>
      %c0_39 = arith.constant 0 : index
      %c0_40 = arith.constant 0 : index
      %50 = vector.load %arg10[%c0_39, %c0_40] : memref<8x1xf32, #tpu.memory_space<vmem>>, vector<8x1xf32>
      tpu.vector_store %arg10[%c0_39, %c0_40], %49 {strides = array<i32>} : memref<8x1xf32, #tpu.memory_space<vmem>>, vector<8x1xf32>,
      %cst_41 = arith.constant 0.000000e+00 : f32
      %51 = vector.broadcast %cst_41 : f32 to vector<8x8xf32>
      %c0_42 = arith.constant 0 : index
      %c0_43 = arith.constant 0 : index
      %52 = vector.load %arg11[%c0_42, %c0_43] : memref<8x8xf32, #tpu.memory_space<vmem>>, vector<8x8xf32>
      tpu.vector_store %arg11[%c0_42, %c0_43], %51 {strides = array<i32>} : memref<8x8xf32, #tpu.memory_space<vmem>>, vector<8x8xf32>,
    } else {
    }
    %c0 = arith.constant 0 : index
    %c0_1 = arith.constant 0 : index
    %c0_2 = arith.constant 0 : index
    %c0_3 = arith.constant 0 : index
    %3 = vector.load %arg4[%c0, %c0_1, %c0_2, %c0_3] : memref<1x1x8x8xbf16, #tpu.memory_space<vmem>>, vector<1x1x8x8xbf16>
    %4 = vector.shape_cast %3 : vector<1x1x8x8xbf16> to vector<8x8xbf16>
    %c0_4 = arith.constant 0 : index
    %c0_5 = arith.constant 0 : index
    %c0_6 = arith.constant 0 : index
    %c0_7 = arith.constant 0 : index
    %5 = vector.load %arg5[%c0_4, %c0_5, %c0_6, %c0_7] : memref<1x1x8x8xbf16, #tpu.memory_space<vmem>>, vector<1x1x8x8xbf16>
    %6 = vector.shape_cast %5 : vector<1x1x8x8xbf16> to vector<8x8xbf16>
    %cst = arith.constant dense<0.000000e+00> : vector<8x8xf32>
    %7 = tpu.matmul %4, %6, %cst {dimension_numbers = #tpu.dot_dimension_numbers<[1], [1], [0], [0], [0, 0, 1, 0], [], []>} : vector<8x8xbf16>, vector<8x8xbf16>, vector<8x8xf32> -> vector<8x8xf32>
    %cst_8 = arith.constant 0.353553385 : f32
    %8 = vector.broadcast %cst_8 : f32 to vector<8x8xf32>
    %9 = arith.mulf %7, %8 : vector<8x8xf32>
    %c0_9 = arith.constant 0 : index
    %c0_10 = arith.constant 0 : index
    %c0_11 = arith.constant 0 : index
    %10 = vector.load %arg7[%c0_9, %c0_10, %c0_11] : memref<1x8x8xbf16, #tpu.memory_space<vmem>>, vector<1x8x8xbf16>
    %11 = vector.shape_cast %10 : vector<1x8x8xbf16> to vector<8x8xbf16>
    %12 = arith.extf %11 : vector<8x8xbf16> to vector<8x8xf32>
    %13 = arith.mulf %9, %12 : vector<8x8xf32>
    %cst_12 = arith.constant 1.000000e+00 : f32
    %14 = vector.broadcast %cst_12 : f32 to vector<8x8xf32>
    %15 = arith.subf %14, %12 : vector<8x8xf32>
    %cst_13 = arith.constant 1.000000e+04 : f32
    %16 = vector.broadcast %cst_13 : f32 to vector<8x8xf32>
    %17 = arith.mulf %16, %15 : vector<8x8xf32>
    %18 = arith.subf %13, %17 : vector<8x8xf32>
    %c0_14 = arith.constant 0 : index
    %c0_15 = arith.constant 0 : index
    %19 = vector.load %arg9[%c0_14, %c0_15] : memref<8x1xf32, #tpu.memory_space<vmem>>, vector<8x1xf32>
    %cst_16 = arith.constant dense<0xFF800000> : vector<8xf32>
    %20 = vector.multi_reduction <maximumf>, %18, %cst_16 [1] : vector<8x8xf32> to vector<8xf32>
    %21 = vector.shape_cast %20 : vector<8xf32> to vector<8x1xf32>
    %22 = arith.maximumf %19, %21 : vector<8x1xf32>
    %23 = arith.subf %19, %22 : vector<8x1xf32>
    %24 = math.exp %23 : vector<8x1xf32>
    %25 = vector.broadcast %22 : vector<8x1xf32> to vector<8x8xf32>
    %26 = arith.subf %18, %25 : vector<8x8xf32>
    %27 = math.exp %26 : vector<8x8xf32>
    %c0_17 = arith.constant 0 : index
    %c0_18 = arith.constant 0 : index
    %28 = vector.load %arg10[%c0_17, %c0_18] : memref<8x1xf32, #tpu.memory_space<vmem>>, vector<8x1xf32>
    %29 = arith.mulf %24, %28 : vector<8x1xf32>
    %cst_19 = arith.constant dense<0.000000e+00> : vector<8xf32>
    %30 = vector.multi_reduction <add>, %27, %cst_19 [1] : vector<8x8xf32> to vector<8xf32>
    %31 = vector.shape_cast %30 : vector<8xf32> to vector<8x1xf32>
    %32 = arith.addf %29, %31 : vector<8x1xf32>
    %c0_20 = arith.constant 0 : index
    %c0_21 = arith.constant 0 : index
    %33 = vector.load %arg10[%c0_20, %c0_21] : memref<8x1xf32, #tpu.memory_space<vmem>>, vector<8x1xf32>
    tpu.vector_store %arg10[%c0_20, %c0_21], %32 {strides = array<i32>} : memref<8x1xf32, #tpu.memory_space<vmem>>, vector<8x1xf32>,
    %c0_22 = arith.constant 0 : index
    %c0_23 = arith.constant 0 : index
    %34 = vector.load %arg11[%c0_22, %c0_23] : memref<8x8xf32, #tpu.memory_space<vmem>>, vector<8x8xf32>
    %35 = vector.broadcast %24 : vector<8x1xf32> to vector<8x8xf32>
    %36 = arith.mulf %35, %34 : vector<8x8xf32>
    %37 = arith.truncf %27 : vector<8x8xf32> to vector<8x8xbf16>
    %c0_24 = arith.constant 0 : index
    %c0_25 = arith.constant 0 : index
    %c0_26 = arith.constant 0 : index
    %c0_27 = arith.constant 0 : index
    %38 = vector.load %arg6[%c0_24, %c0_25, %c0_26, %c0_27] : memref<1x1x8x8xbf16, #tpu.memory_space<vmem>>, vector<1x1x8x8xbf16>
    %39 = vector.shape_cast %38 : vector<1x1x8x8xbf16> to vector<8x8xbf16>
    %cst_28 = arith.constant dense<0.000000e+00> : vector<8x8xf32>
    %40 = tpu.matmul %37, %39, %cst_28 {dimension_numbers = #tpu.dot_dimension_numbers<[1], [0], [0], [1], [0, 0, 1, 1], [], []>} : vector<8x8xbf16>, vector<8x8xbf16>, vector<8x8xf32> -> vector<8x8xf32>
    %41 = arith.addf %36, %40 : vector<8x8xf32>
    %c0_29 = arith.constant 0 : index
    %c0_30 = arith.constant 0 : index
    %42 = vector.load %arg11[%c0_29, %c0_30] : memref<8x8xf32, #tpu.memory_space<vmem>>, vector<8x8xf32>
    tpu.vector_store %arg11[%c0_29, %c0_30], %41 {strides = array<i32>} : memref<8x8xf32, #tpu.memory_space<vmem>>, vector<8x8xf32>,
    %c0_31 = arith.constant 0 : index
    %c0_32 = arith.constant 0 : index
    %43 = vector.load %arg9[%c0_31, %c0_32] : memref<8x1xf32, #tpu.memory_space<vmem>>, vector<8x1xf32>
    tpu.vector_store %arg9[%c0_31, %c0_32], %22 {strides = array<i32>} : memref<8x1xf32, #tpu.memory_space<vmem>>, vector<8x1xf32>,
    %c0_i32_33 = arith.constant 0 : i32
    %44 = arith.cmpi eq, %arg3, %c0_i32_33 : i32
    %45 = arith.extui %44 : i1 to i32
    %c0_i32_34 = arith.constant 0 : i32
    %46 = arith.cmpi ne, %45, %c0_i32_34 : i32
    scf.if %46 {
      %c0_35 = arith.constant 0 : index
      %c0_36 = arith.constant 0 : index
      %47 = vector.load %arg10[%c0_35, %c0_36] : memref<8x1xf32, #tpu.memory_space<vmem>>, vector<8x1xf32>
      %48 = tpu.reciprocal %47 {approx = true} : vector<8x1xf32> -> vector<8x1xf32>
      %c0_37 = arith.constant 0 : index
      %c0_38 = arith.constant 0 : index
      %49 = vector.load %arg11[%c0_37, %c0_38] : memref<8x8xf32, #tpu.memory_space<vmem>>, vector<8x8xf32>
      %50 = vector.broadcast %48 : vector<8x1xf32> to vector<8x8xf32>
      %51 = arith.mulf %49, %50 : vector<8x8xf32>
      %52 = arith.truncf %51 : vector<8x8xf32> to vector<8x8xbf16>
      %c0_39 = arith.constant 0 : index
      %c0_40 = arith.constant 0 : index
      %c0_41 = arith.constant 0 : index
      %c0_42 = arith.constant 0 : index
      %53 = vector.load %arg8[%c0_39, %c0_40, %c0_41, %c0_42] : memref<1x1x8x8xbf16, #tpu.memory_space<vmem>>, vector<1x1x8x8xbf16>
      %54 = vector.shape_cast %53 : vector<1x1x8x8xbf16> to vector<8x8xbf16>
      %55 = vector.shape_cast %52 : vector<8x8xbf16> to vector<1x1x8x8xbf16>
      tpu.vector_store %arg8[%c0_39, %c0_40, %c0_41, %c0_42], %55 {strides = array<i32>} : memref<1x1x8x8xbf16, #tpu.memory_space<vmem>>, vector<1x1x8x8xbf16>,
    } else {
    }
    return
  }
  func.func @transform_0(%arg0: i32, %arg1: i32, %arg2: i32, %arg3: i32) -> (i32, i32, i32, i32) {
    %c0_i32 = arith.constant 0 : i32
    %c0_i32_0 = arith.constant 0 : i32
    return %arg0, %arg1, %arg2, %c0_i32 : i32, i32, i32, i32
  }
  func.func @transform_1(%arg0: i32, %arg1: i32, %arg2: i32, %arg3: i32) -> (i32, i32, i32, i32) {
    %c0_i32 = arith.constant 0 : i32
    %c0_i32_0 = arith.constant 0 : i32
    return %arg0, %arg1, %arg3, %c0_i32 : i32, i32, i32, i32
  }
  func.func @transform_2(%arg0: i32, %arg1: i32, %arg2: i32, %arg3: i32) -> (i32, i32, i32, i32) {
    %c0_i32 = arith.constant 0 : i32
    %c0_i32_0 = arith.constant 0 : i32
    return %arg0, %arg1, %arg3, %c0_i32 : i32, i32, i32, i32
  }
  func.func @transform_3(%arg0: i32, %arg1: i32, %arg2: i32, %arg3: i32) -> (i32, i32, i32) {
    %c0_i32 = arith.constant 0 : i32
    return %arg0, %arg2, %arg3 : i32, i32, i32
  }
  func.func @transform_4(%arg0: i32, %arg1: i32, %arg2: i32, %arg3: i32) -> (i32, i32, i32, i32) {
    %c0_i32 = arith.constant 0 : i32
    %c0_i32_0 = arith.constant 0 : i32
    return %arg0, %arg1, %arg2, %c0_i32 : i32, i32, i32, i32
  }
}

module attributes {stable_mosaic.version = 11 : i64} {
  func.func @_logits_kernel(%arg0: i32, %arg1: i32, %arg2: i32, %arg3: memref<16x32xbf16, #tpu.memory_space<vmem>>, %arg4: memref<64x32xbf16, #tpu.memory_space<vmem>>, %arg5: memref<16x64xbf16, #tpu.memory_space<vmem>>, %arg6: memref<16x64xf32, #tpu.memory_space<vmem>>) attributes {dimension_semantics = [#tpu.dimension_semantics<parallel>, #tpu.dimension_semantics<parallel>, #tpu.dimension_semantics<arbitrary>], iteration_bounds = array<i64: 1, 1, 1>, scalar_prefetch = 0 : i64, scratch_operands = 1 : i64, tpu.core_type = #tpu.core_type<tc>, window_params = [{transform_indices = @transform_0, window_bounds = array<i64: 16, 32>}, {transform_indices = @transform_1, window_bounds = array<i64: 64, 32>}, {transform_indices = @transform_2, window_bounds = array<i64: 16, 64>}]} {
    %c0_i32 = arith.constant 0 : i32
    %0 = arith.cmpi eq, %arg2, %c0_i32 : i32
    %1 = arith.extui %0 : i1 to i32
    %c0_i32_0 = arith.constant 0 : i32
    %2 = arith.cmpi ne, %1, %c0_i32_0 : i32
    scf.if %2 {
      %cst_10 = arith.constant 0.000000e+00 : f32
      %12 = vector.broadcast %cst_10 : f32 to vector<16x64xf32>
      %c0_11 = arith.constant 0 : index
      %c0_12 = arith.constant 0 : index
      %13 = vector.load %arg6[%c0_11, %c0_12] : memref<16x64xf32, #tpu.memory_space<vmem>>, vector<16x64xf32>
      tpu.vector_store %arg6[%c0_11, %c0_12], %12 {strides = array<i32>} : memref<16x64xf32, #tpu.memory_space<vmem>>, vector<16x64xf32>,
    } else {
    }
    %c0 = arith.constant 0 : index
    %c0_1 = arith.constant 0 : index
    %3 = vector.load %arg6[%c0, %c0_1] : memref<16x64xf32, #tpu.memory_space<vmem>>, vector<16x64xf32>
    %c0_2 = arith.constant 0 : index
    %c0_3 = arith.constant 0 : index
    %4 = vector.load %arg3[%c0_2, %c0_3] : memref<16x32xbf16, #tpu.memory_space<vmem>>, vector<16x32xbf16>
    %c0_4 = arith.constant 0 : index
    %c0_5 = arith.constant 0 : index
    %5 = vector.load %arg4[%c0_4, %c0_5] : memref<64x32xbf16, #tpu.memory_space<vmem>>, vector<64x32xbf16>
    %cst = arith.constant dense<0.000000e+00> : vector<16x64xf32>
    %6 = tpu.matmul %4, %5, %cst {dimension_numbers = #tpu.dot_dimension_numbers<[1], [1], [0], [0], [0, 0, 1, 0], [], []>} : vector<16x32xbf16>, vector<64x32xbf16>, vector<16x64xf32> -> vector<16x64xf32>
    %7 = arith.addf %3, %6 : vector<16x64xf32>
    %c0_6 = arith.constant 0 : index
    %c0_7 = arith.constant 0 : index
    %8 = vector.load %arg6[%c0_6, %c0_7] : memref<16x64xf32, #tpu.memory_space<vmem>>, vector<16x64xf32>
    tpu.vector_store %arg6[%c0_6, %c0_7], %7 {strides = array<i32>} : memref<16x64xf32, #tpu.memory_space<vmem>>, vector<16x64xf32>,
    %c0_i32_8 = arith.constant 0 : i32
    %9 = arith.cmpi eq, %arg2, %c0_i32_8 : i32
    %10 = arith.extui %9 : i1 to i32
    %c0_i32_9 = arith.constant 0 : i32
    %11 = arith.cmpi ne, %10, %c0_i32_9 : i32
    scf.if %11 {
      %c0_10 = arith.constant 0 : index
      %c0_11 = arith.constant 0 : index
      %12 = vector.load %arg6[%c0_10, %c0_11] : memref<16x64xf32, #tpu.memory_space<vmem>>, vector<16x64xf32>
      %13 = arith.truncf %12 : vector<16x64xf32> to vector<16x64xbf16>
      %c0_12 = arith.constant 0 : index
      %c0_13 = arith.constant 0 : index
      %14 = vector.load %arg5[%c0_12, %c0_13] : memref<16x64xbf16, #tpu.memory_space<vmem>>, vector<16x64xbf16>
      tpu.vector_store %arg5[%c0_12, %c0_13], %13 {strides = array<i32>} : memref<16x64xbf16, #tpu.memory_space<vmem>>, vector<16x64xbf16>,
    } else {
    }
    return
  }
  func.func @transform_0(%arg0: i32, %arg1: i32, %arg2: i32) -> (i32, i32) {
    %c0_i32 = arith.constant 0 : i32
    return %arg0, %arg2 : i32, i32
  }
  func.func @transform_1(%arg0: i32, %arg1: i32, %arg2: i32) -> (i32, i32) {
    %c0_i32 = arith.constant 0 : i32
    return %arg1, %arg2 : i32, i32
  }
  func.func @transform_2(%arg0: i32, %arg1: i32, %arg2: i32) -> (i32, i32) {
    %c0_i32 = arith.constant 0 : i32
    return %arg0, %arg1 : i32, i32
  }
}

module attributes {stable_mosaic.version = 11 : i64} {
  func.func @_linear_kernel(%arg0: i32, %arg1: i32, %arg2: i32, %arg3: memref<16x32xbf16, #tpu.memory_space<vmem>>, %arg4: memref<32x128xbf16, #tpu.memory_space<vmem>>, %arg5: memref<1x128xf32, #tpu.memory_space<vmem>>, %arg6: memref<16x128xbf16, #tpu.memory_space<vmem>>, %arg7: memref<16x128xf32, #tpu.memory_space<vmem>>) attributes {dimension_semantics = [#tpu.dimension_semantics<parallel>, #tpu.dimension_semantics<parallel>, #tpu.dimension_semantics<arbitrary>], iteration_bounds = array<i64: 1, 1, 1>, scalar_prefetch = 0 : i64, scratch_operands = 1 : i64, tpu.core_type = #tpu.core_type<tc>, window_params = [{transform_indices = @transform_0, window_bounds = array<i64: 16, 32>}, {transform_indices = @transform_1, window_bounds = array<i64: 32, 128>}, {transform_indices = @transform_2, window_bounds = array<i64: 1, 128>}, {transform_indices = @transform_3, window_bounds = array<i64: 16, 128>}]} {
    %c0_i32 = arith.constant 0 : i32
    %0 = arith.cmpi eq, %arg2, %c0_i32 : i32
    %1 = arith.extui %0 : i1 to i32
    %c0_i32_0 = arith.constant 0 : i32
    %2 = arith.cmpi ne, %1, %c0_i32_0 : i32
    scf.if %2 {
      %cst_10 = arith.constant 0.000000e+00 : f32
      %12 = vector.broadcast %cst_10 : f32 to vector<16x128xf32>
      %c0_11 = arith.constant 0 : index
      %c0_12 = arith.constant 0 : index
      %13 = vector.load %arg7[%c0_11, %c0_12] : memref<16x128xf32, #tpu.memory_space<vmem>>, vector<16x128xf32>
      tpu.vector_store %arg7[%c0_11, %c0_12], %12 {strides = array<i32>} : memref<16x128xf32, #tpu.memory_space<vmem>>, vector<16x128xf32>,
    } else {
    }
    %c0 = arith.constant 0 : index
    %c0_1 = arith.constant 0 : index
    %3 = vector.load %arg7[%c0, %c0_1] : memref<16x128xf32, #tpu.memory_space<vmem>>, vector<16x128xf32>
    %c0_2 = arith.constant 0 : index
    %c0_3 = arith.constant 0 : index
    %4 = vector.load %arg3[%c0_2, %c0_3] : memref<16x32xbf16, #tpu.memory_space<vmem>>, vector<16x32xbf16>
    %c0_4 = arith.constant 0 : index
    %c0_5 = arith.constant 0 : index
    %5 = vector.load %arg4[%c0_4, %c0_5] : memref<32x128xbf16, #tpu.memory_space<vmem>>, vector<32x128xbf16>
    %cst = arith.constant dense<0.000000e+00> : vector<16x128xf32>
    %6 = tpu.matmul %4, %5, %cst {dimension_numbers = #tpu.dot_dimension_numbers<[1], [0], [0], [1], [0, 0, 1, 1], [], []>} : vector<16x32xbf16>, vector<32x128xbf16>, vector<16x128xf32> -> vector<16x128xf32>
    %7 = arith.addf %3, %6 : vector<16x128xf32>
    %c0_6 = arith.constant 0 : index
    %c0_7 = arith.constant 0 : index
    %8 = vector.load %arg7[%c0_6, %c0_7] : memref<16x128xf32, #tpu.memory_space<vmem>>, vector<16x128xf32>
    tpu.vector_store %arg7[%c0_6, %c0_7], %7 {strides = array<i32>} : memref<16x128xf32, #tpu.memory_space<vmem>>, vector<16x128xf32>,
    %c0_i32_8 = arith.constant 0 : i32
    %9 = arith.cmpi eq, %arg2, %c0_i32_8 : i32
    %10 = arith.extui %9 : i1 to i32
    %c0_i32_9 = arith.constant 0 : i32
    %11 = arith.cmpi ne, %10, %c0_i32_9 : i32
    scf.if %11 {
      %c0_10 = arith.constant 0 : index
      %c0_11 = arith.constant 0 : index
      %12 = vector.load %arg7[%c0_10, %c0_11] : memref<16x128xf32, #tpu.memory_space<vmem>>, vector<16x128xf32>
      %c0_12 = arith.constant 0 : index
      %c0_13 = arith.constant 0 : index
      %13 = vector.load %arg5[%c0_12, %c0_13] : memref<1x128xf32, #tpu.memory_space<vmem>>, vector<1x128xf32>
      %14 = vector.broadcast %13 : vector<1x128xf32> to vector<16x128xf32>
      %15 = arith.addf %12, %14 : vector<16x128xf32>
      %cst_14 = arith.constant 5.000000e-01 : f32
      %16 = vector.broadcast %cst_14 : f32 to vector<16x128xf32>
      %17 = arith.mulf %16, %15 : vector<16x128xf32>
      %cst_15 = arith.constant 0.797884583 : f32
      %18 = vector.broadcast %cst_15 : f32 to vector<16x128xf32>
      %19 = arith.mulf %18, %15 : vector<16x128xf32>
      %cst_16 = arith.constant 4.471500e-02 : f32
      %20 = vector.broadcast %cst_16 : f32 to vector<16x128xf32>
      %21 = arith.mulf %20, %15 : vector<16x128xf32>
      %22 = arith.mulf %21, %15 : vector<16x128xf32>
      %cst_17 = arith.constant 1.000000e+00 : f32
      %23 = vector.broadcast %cst_17 : f32 to vector<16x128xf32>
      %24 = arith.addf %23, %22 : vector<16x128xf32>
      %25 = arith.mulf %19, %24 : vector<16x128xf32>
      %26 = math.tanh %25 : vector<16x128xf32>
      %cst_18 = arith.constant 1.000000e+00 : f32
      %27 = vector.broadcast %cst_18 : f32 to vector<16x128xf32>
      %28 = arith.addf %27, %26 : vector<16x128xf32>
      %29 = arith.mulf %17, %28 : vector<16x128xf32>
      %30 = arith.truncf %29 : vector<16x128xf32> to vector<16x128xbf16>
      %c0_19 = arith.constant 0 : index
      %c0_20 = arith.constant 0 : index
      %31 = vector.load %arg6[%c0_19, %c0_20] : memref<16x128xbf16, #tpu.memory_space<vmem>>, vector<16x128xbf16>
      tpu.vector_store %arg6[%c0_19, %c0_20], %30 {strides = array<i32>} : memref<16x128xbf16, #tpu.memory_space<vmem>>, vector<16x128xbf16>,
    } else {
    }
    return
  }
  func.func @transform_0(%arg0: i32, %arg1: i32, %arg2: i32) -> (i32, i32) {
    %c0_i32 = arith.constant 0 : i32
    return %arg0, %arg2 : i32, i32
  }
  func.func @transform_1(%arg0: i32, %arg1: i32, %arg2: i32) -> (i32, i32) {
    %c0_i32 = arith.constant 0 : i32
    return %arg2, %arg1 : i32, i32
  }
  func.func @transform_2(%arg0: i32, %arg1: i32, %arg2: i32) -> (i32, i32) {
    %c0_i32 = arith.constant 0 : i32
    %c0_i32_0 = arith.constant 0 : i32
    return %c0_i32, %arg1 : i32, i32
  }
  func.func @transform_3(%arg0: i32, %arg1: i32, %arg2: i32) -> (i32, i32) {
    %c0_i32 = arith.constant 0 : i32
    return %arg0, %arg1 : i32, i32
  }
}

module attributes {stable_mosaic.version = 11 : i64} {
  func.func @_linear_kernel(%arg0: i32, %arg1: i32, %arg2: i32, %arg3: memref<16x128xbf16, #tpu.memory_space<vmem>>, %arg4: memref<128x32xbf16, #tpu.memory_space<vmem>>, %arg5: memref<1x32xf32, #tpu.memory_space<vmem>>, %arg6: memref<16x32xbf16, #tpu.memory_space<vmem>>, %arg7: memref<16x32xbf16, #tpu.memory_space<vmem>>, %arg8: memref<16x32xf32, #tpu.memory_space<vmem>>) attributes {dimension_semantics = [#tpu.dimension_semantics<parallel>, #tpu.dimension_semantics<parallel>, #tpu.dimension_semantics<arbitrary>], iteration_bounds = array<i64: 1, 1, 1>, scalar_prefetch = 0 : i64, scratch_operands = 1 : i64, tpu.core_type = #tpu.core_type<tc>, window_params = [{transform_indices = @transform_0, window_bounds = array<i64: 16, 128>}, {transform_indices = @transform_1, window_bounds = array<i64: 128, 32>}, {transform_indices = @transform_2, window_bounds = array<i64: 1, 32>}, {transform_indices = @transform_3, window_bounds = array<i64: 16, 32>}, {transform_indices = @transform_4, window_bounds = array<i64: 16, 32>}]} {
    %c0_i32 = arith.constant 0 : i32
    %0 = arith.cmpi eq, %arg2, %c0_i32 : i32
    %1 = arith.extui %0 : i1 to i32
    %c0_i32_0 = arith.constant 0 : i32
    %2 = arith.cmpi ne, %1, %c0_i32_0 : i32
    scf.if %2 {
      %cst_10 = arith.constant 0.000000e+00 : f32
      %12 = vector.broadcast %cst_10 : f32 to vector<16x32xf32>
      %c0_11 = arith.constant 0 : index
      %c0_12 = arith.constant 0 : index
      %13 = vector.load %arg8[%c0_11, %c0_12] : memref<16x32xf32, #tpu.memory_space<vmem>>, vector<16x32xf32>
      tpu.vector_store %arg8[%c0_11, %c0_12], %12 {strides = array<i32>} : memref<16x32xf32, #tpu.memory_space<vmem>>, vector<16x32xf32>,
    } else {
    }
    %c0 = arith.constant 0 : index
    %c0_1 = arith.constant 0 : index
    %3 = vector.load %arg8[%c0, %c0_1] : memref<16x32xf32, #tpu.memory_space<vmem>>, vector<16x32xf32>
    %c0_2 = arith.constant 0 : index
    %c0_3 = arith.constant 0 : index
    %4 = vector.load %arg3[%c0_2, %c0_3] : memref<16x128xbf16, #tpu.memory_space<vmem>>, vector<16x128xbf16>
    %c0_4 = arith.constant 0 : index
    %c0_5 = arith.constant 0 : index
    %5 = vector.load %arg4[%c0_4, %c0_5] : memref<128x32xbf16, #tpu.memory_space<vmem>>, vector<128x32xbf16>
    %cst = arith.constant dense<0.000000e+00> : vector<16x32xf32>
    %6 = tpu.matmul %4, %5, %cst {dimension_numbers = #tpu.dot_dimension_numbers<[1], [0], [0], [1], [0, 0, 1, 1], [], []>} : vector<16x128xbf16>, vector<128x32xbf16>, vector<16x32xf32> -> vector<16x32xf32>
    %7 = arith.addf %3, %6 : vector<16x32xf32>
    %c0_6 = arith.constant 0 : index
    %c0_7 = arith.constant 0 : index
    %8 = vector.load %arg8[%c0_6, %c0_7] : memref<16x32xf32, #tpu.memory_space<vmem>>, vector<16x32xf32>
    tpu.vector_store %arg8[%c0_6, %c0_7], %7 {strides = array<i32>} : memref<16x32xf32, #tpu.memory_space<vmem>>, vector<16x32xf32>,
    %c0_i32_8 = arith.constant 0 : i32
    %9 = arith.cmpi eq, %arg2, %c0_i32_8 : i32
    %10 = arith.extui %9 : i1 to i32
    %c0_i32_9 = arith.constant 0 : i32
    %11 = arith.cmpi ne, %10, %c0_i32_9 : i32
    scf.if %11 {
      %c0_10 = arith.constant 0 : index
      %c0_11 = arith.constant 0 : index
      %12 = vector.load %arg8[%c0_10, %c0_11] : memref<16x32xf32, #tpu.memory_space<vmem>>, vector<16x32xf32>
      %c0_12 = arith.constant 0 : index
      %c0_13 = arith.constant 0 : index
      %13 = vector.load %arg5[%c0_12, %c0_13] : memref<1x32xf32, #tpu.memory_space<vmem>>, vector<1x32xf32>
      %14 = vector.broadcast %13 : vector<1x32xf32> to vector<16x32xf32>
      %15 = arith.addf %12, %14 : vector<16x32xf32>
      %c0_14 = arith.constant 0 : index
      %c0_15 = arith.constant 0 : index
      %16 = vector.load %arg6[%c0_14, %c0_15] : memref<16x32xbf16, #tpu.memory_space<vmem>>, vector<16x32xbf16>
      %17 = arith.extf %16 : vector<16x32xbf16> to vector<16x32xf32>
      %18 = arith.addf %15, %17 : vector<16x32xf32>
      %19 = arith.truncf %18 : vector<16x32xf32> to vector<16x32xbf16>
      %c0_16 = arith.constant 0 : index
      %c0_17 = arith.constant 0 : index
      %20 = vector.load %arg7[%c0_16, %c0_17] : memref<16x32xbf16, #tpu.memory_space<vmem>>, vector<16x32xbf16>
      tpu.vector_store %arg7[%c0_16, %c0_17], %19 {strides = array<i32>} : memref<16x32xbf16, #tpu.memory_space<vmem>>, vector<16x32xbf16>,
    } else {
    }
    return
  }
  func.func @transform_0(%arg0: i32, %arg1: i32, %arg2: i32) -> (i32, i32) {
    %c0_i32 = arith.constant 0 : i32
    return %arg0, %arg2 : i32, i32
  }
  func.func @transform_1(%arg0: i32, %arg1: i32, %arg2: i32) -> (i32, i32) {
    %c0_i32 = arith.constant 0 : i32
    return %arg2, %arg1 : i32, i32
  }
  func.func @transform_2(%arg0: i32, %arg1: i32, %arg2: i32) -> (i32, i32) {
    %c0_i32 = arith.constant 0 : i32
    %c0_i32_0 = arith.constant 0 : i32
    return %c0_i32, %arg1 : i32, i32
  }
  func.func @transform_3(%arg0: i32, %arg1: i32, %arg2: i32) -> (i32, i32) {
    %c0_i32 = arith.constant 0 : i32
    return %arg0, %arg1 : i32, i32
  }
  func.func @transform_4(%arg0: i32, %arg1: i32, %arg2: i32) -> (i32, i32) {
    %c0_i32 = arith.constant 0 : i32
    return %arg0, %arg1 : i32, i32
  }
}

</mosaic_0001>

<bundles_post_ra>
// kernel: glm_forward.16
= control target key start
LH: loop header
LB: loop body
LE: loop exit
PB: predicated region body
PF: predicated region fallthrough
CT: control target
= control target key end

     0   :  { %vm18_vm0 = vcmask 261120   ;;  %vm72_vm1 = vcmask 257024   ;;  %s132_s0 = inlined_call_operand.vmem [shape: bf16[16,32], index: 0, kind: input, shape index: {}]   ;;  %s133_s1 = inlined_call_operand.vmem [shape: f32[1,32], index: 1, kind: input, shape index: {}]   ;;  %s134_s2 = inlined_call_operand.vmem [shape: f32[1,32], index: 2, kind: input, shape index: {}]   ;;  %s135_s3 = inlined_call_operand.vmem [shape: bf16[16,32], index: 3, kind: output, shape index: {}]  }
   0x1   :  { %v86_v0 = vld [vmem:[%s132_s0] sm:$0xff]  }
   0x2   :  { %v87_v1 = vunpack.c.l.bf16 %v86_v0  ;;  %v88_v2 = vunpack.c.h.bf16 %v86_v0  ;;  %v79_v22 = vld [vmem:[%s133_s1] ss:$0 sm:$0xff] }
   0x3   :  { %v80_v24 = vld [vmem:[%s134_s2] ss:$0 sm:$0xff] }
   0x4   :  { %v19_v3 = vsel %vm18_vm0, %v87_v1, 0.0  ;;  %v22_v4 = vsel %vm18_vm0, %v88_v2, 0.0 }
   0x5   :  { %20 = vadd.xlane.f32.xlu0 %v19_v3 }
   0x9   :  { %23 = vadd.xlane.f32.xlu0 %v22_v4 }
  0x8e   :  { %v21_v5 = vpop.xlane.xlu0 %20 }
  0x8f   :  { %v26_v6 = vmul.f32 0.03125, %v21_v5 }
  0x91   :  { %v28_v7 = vsub.f32 %v87_v1, %v26_v6 }
  0x92   :  { %v24_v8 = vpop.xlane.xlu0 %23 }
  0x93   :  { %v27_v9 = vmul.f32 0.03125, %v24_v8  ;;  %v30_v10 = vmul.f32 %v28_v7, %v28_v7 }
  0x95   :  { %v29_v11 = vsub.f32 %v88_v2, %v27_v9  ;;  %v32_v12 = vsel %vm18_vm0, %v30_v10, 0.0 }
  0x96   :  { %33 = vadd.xlane.f32.xlu1 %v32_v12 }
  0x97   :  { %v31_v13 = vmul.f32 %v29_v11, %v29_v11 }
  0x99   :  { %v35_v14 = vsel %vm18_vm0, %v31_v13, 0.0 }
  0x9a   :  { %36 = vadd.xlane.f32.xlu1 %v35_v14 }
 0x11f   :  { %v34_v15 = vpop.xlane.xlu1 %33 }
 0x120   :  { %v38_v16 = vmul.f32 0.03125, %v34_v15 }
 0x122   :  { %v40_v17 = vadd.f32 1e-05, %v38_v16 }
 0x123   :  { %v37_v18 = vpop.xlane.xlu1 %36 }
 0x124   :  { %89 = vrsqrt.f32 %v40_v17  ;;  %v39_v19 = vmul.f32 0.03125, %v37_v18 }
 0x126   :  { %v41_v20 = vadd.f32 1e-05, %v39_v19 }
 0x128   :  { %91 = vrsqrt.f32 %v41_v20 }
 0x131   :  { %v90_v21 = vpop.eup %89 }
 0x132   :  { %v44_v23 = vmul.f32 %v90_v21, %v28_v7 }
 0x134   :  { %v53_v25 = vmul.f32 %v79_v22, %v44_v23 }
 0x135   :  { %v92_v26 = vpop.eup %91 }
 0x136   :  { %v62_v27 = vadd.f32 %v80_v24, %v53_v25  ;;  %v45_v28 = vmul.f32 %v92_v26, %v29_v11 }
 0x138   :  { %v83_v29 = vpack.c.bf16 %v62_v27, %v62_v27  ;;  %v54_v30 = vmul.f32 %v79_v22, %v45_v28 }
 0x13a   :  { %73 = vst.msk [vmem:[%s135_s3] sm:$0xf] %vm72_vm1, %v83_v29  ;;  %v63_v31 = vadd.f32 %v80_v24, %v54_v30 }
 0x13c   :  { %v84_v32 = vpack.c.bf16 %v63_v31, %v63_v31 }
 0x13e   :  { %74 = vst.msk [vmem:[%s135_s3 + $0x4] sm:$0xf] %vm72_vm1, %v84_v32 }

// kernel: glm_forward.17
= control target key start
LH: loop header
LB: loop body
LE: loop exit
PB: predicated region body
PF: predicated region fallthrough
CT: control target
= control target key end

     0   :  { %vm19_vm0 = vcmask 785408   ;;  %v151_v0 = vmov 0.0   ;;  %vm152_vm1 = vmmov 0   ;;  %vm47_vm2 = vcmask 261120   ;;  %s195_s1 = inlined_call_operand.vmem [shape: bf16[32,96], index: 1, kind: input, shape index: {}]   ;;  %s196_s0 = inlined_call_operand.vmem [shape: bf16[16,32], index: 0, kind: input, shape index: {}]   ;;  %s197_s2 = inlined_call_operand.vmem [shape: f32[1,96], index: 2, kind: input, shape index: {}]   ;;  %s198_s3 = inlined_call_operand.vmem [shape: bf16[16,96], index: 3, kind: output, shape index: {}]  }
   0x1   :  { %138 = vmatprep.subr.bf16.mxu0 %v151_v0  ;;  %v148_v1 = vld [vmem:[%s195_s1 + $0x8] sm:$0xff]   ;;  %142 = vmatprep.mubr.msk.bf16.mxu0 %vm152_vm1, %v151_v0  ;;  %20 = vst.msk [vmem:[#allocation2] sm:$0xff] %vm19_vm0, %v151_v0  ;;  %21 = vst.msk [vmem:[#allocation2 + $0x8] sm:$0xff] %vm19_vm0, %v151_v0  ;;  %v149_v2 = vld [vmem:[%s195_s1] sm:$0xff]   ;;  %vm119_vm3 = vcmask 781312  }
   0x2   :  { %139 = vmatpush3.bf16.msra.mxu0 %v148_v1  ;;  %v150_v3 = vld [vmem:[%s196_s0] sm:$0xff]  }
   0x3   :  { %140 = vmatprep.subr.bf16.mxu0 %v151_v0  ;;  %v130_v12 = vld [vmem:[%s197_s2] ss:$0 sm:$0xff] }
   0x6   :  { %141 = vmatpush3.bf16.msra.mxu0 %v149_v2 }
   0x8   :  { %v22_v4 = vld [vmem:[#allocation2] sm:$0xff]  ;;  %v23_v8 = vld [vmem:[#allocation2 + $0x8] sm:$0xff] }
   0x9   :  { %143 = vmatmul.mubr.msk.bf16.vlgmr.msra.gmra.mxu0 %vm47_vm2, %v150_v3 }
  0xc9   :  { %v85_v5 = vpop.f32.mrf.mxu0 }
  0xca   :  { %v92_v6 = vadd.f32 %v85_v5, %v22_v4 }
  0xcb   :  { %v144_v7 = vpop.f32.mrf.mxu0 }
  0xcc   :  { %95 = vst.msk [vmem:[#allocation2] sm:$0xff] %vm19_vm0, %v92_v6 }
  0xcd   :  { %v88_v9 = vpop.f32.mrf.mxu0 }
  0xce   :  { %v93_v10 = vadd.f32 %v88_v9, %v23_v8 }
  0xcf   :  { %v145_v11 = vpop.f32.mrf.mxu0 }
  0xd0   :  { %96 = vst.msk [vmem:[#allocation2 + $0x8] sm:$0xff] %vm19_vm0, %v93_v10 }
  0xd3   :  { %v100_v13 = vld [vmem:[#allocation2] sm:$0xff] }
  0xd4   :  { %v109_v14 = vadd.f32 %v130_v12, %v100_v13 }
  0xd6   :  { %v133_v15 = vpack.c.bf16 %v109_v14, %v109_v14 }
  0xd7   :  { %v101_v16 = vld [vmem:[#allocation2 + $0x8] sm:$0xff] }
  0xd8   :  { %120 = vst.msk [vmem:[%s198_s3] sm:$0xf] %vm119_vm3, %v133_v15  ;;  %v110_v17 = vadd.f32 %v130_v12, %v101_v16 }
  0xda   :  { %v134_v18 = vpack.c.bf16 %v110_v17, %v110_v17 }
  0xdc   :  { %121 = vst.msk [vmem:[%s198_s3 + $0x4] sm:$0xf] %vm119_vm3, %v134_v18 }

// kernel: glm_forward.19
= control target key start
LH: loop header
LB: loop body
LE: loop exit
PB: predicated region body
PF: predicated region fallthrough
CT: control target
= control target key end

     0   :  { %vm22_vm0 = vcmask 261120   ;;  %v163_v0 = vmov 0.0   ;;  %vm164_vm1 = vmmov 0   ;;  %vm127_vm2 = vcmask 257024   ;;  %s216_s1 = inlined_call_operand.vmem [shape: bf16[32,32], index: 1, kind: input, shape index: {}]   ;;  %s217_s0 = inlined_call_operand.vmem [shape: bf16[16,32], index: 0, kind: input, shape index: {}]   ;;  %s218_s3 = inlined_call_operand.vmem [shape: bf16[16,32], index: 3, kind: input, shape index: {}]   ;;  %s219_s2 = inlined_call_operand.vmem [shape: f32[1,32], index: 2, kind: input, shape index: {}]   ;;  %s220_s4 = inlined_call_operand.vmem [shape: bf16[16,32], index: 4, kind: output, shape index: {}]  }
   0x1   :  { %150 = vmatprep.subr.bf16.mxu0 %v163_v0  ;;  %v160_v1 = vld [vmem:[%s216_s1 + $0x8] sm:$0xff]   ;;  %154 = vmatprep.mubr.msk.bf16.mxu0 %vm164_vm1, %v163_v0  ;;  %23 = vst.msk [vmem:[#allocation2] sm:$0xff] %vm22_vm0, %v163_v0  ;;  %24 = vst.msk [vmem:[#allocation2 + $0x8] sm:$0xff] %vm22_vm0, %v163_v0  ;;  %v161_v2 = vld [vmem:[%s216_s1] sm:$0xff]  }
   0x2   :  { %151 = vmatpush3.bf16.msra.mxu0 %v160_v1  ;;  %v162_v3 = vld [vmem:[%s217_s0] sm:$0xff]  }
   0x3   :  { %152 = vmatprep.subr.bf16.mxu0 %v163_v0  ;;  %v144_v11 = vld [vmem:[%s218_s3] sm:$0xff]  }
   0x4   :  { %v138_v13 = vld [vmem:[%s219_s2] ss:$0 sm:$0xff]  ;;  %v145_v14 = vunpack.c.l.bf16 %v144_v11  ;;  %v146_v18 = vunpack.c.h.bf16 %v144_v11 }
   0x6   :  { %153 = vmatpush3.bf16.msra.mxu0 %v161_v2 }
   0x8   :  { %v25_v4 = vld [vmem:[#allocation2] sm:$0xff]  ;;  %v26_v8 = vld [vmem:[#allocation2 + $0x8] sm:$0xff] }
   0x9   :  { %155 = vmatmul.mubr.msk.bf16.vlgmr.msra.gmra.mxu0 %vm22_vm0, %v162_v3 }
  0xc9   :  { %v88_v5 = vpop.f32.mrf.mxu0 }
  0xca   :  { %v95_v6 = vadd.f32 %v88_v5, %v25_v4 }
  0xcb   :  { %v156_v7 = vpop.f32.mrf.mxu0 }
  0xcc   :  { %97 = vst.msk [vmem:[#allocation2] sm:$0xff] %vm22_vm0, %v95_v6 }
  0xcd   :  { %v91_v9 = vpop.f32.mrf.mxu0 }
  0xce   :  { %v96_v10 = vadd.f32 %v91_v9, %v26_v8 }
  0xcf   :  { %v157_v12 = vpop.f32.mrf.mxu0 }
  0xd0   :  { %98 = vst.msk [vmem:[#allocation2 + $0x8] sm:$0xff] %vm22_vm0, %v96_v10 }
  0xd3   :  { %v102_v15 = vld [vmem:[#allocation2] sm:$0xff] }
  0xd4   :  { %v111_v16 = vadd.f32 %v138_v13, %v102_v15 }
  0xd6   :  { %v117_v17 = vadd.f32 %v145_v14, %v111_v16 }
  0xd7   :  { %v103_v19 = vld [vmem:[#allocation2 + $0x8] sm:$0xff] }
  0xd8   :  { %v141_v20 = vpack.c.bf16 %v117_v17, %v117_v17  ;;  %v112_v21 = vadd.f32 %v138_v13, %v103_v19 }
  0xda   :  { %128 = vst.msk [vmem:[%s220_s4] sm:$0xf] %vm127_vm2, %v141_v20  ;;  %v118_v22 = vadd.f32 %v146_v18, %v112_v21 }
  0xdc   :  { %v142_v23 = vpack.c.bf16 %v118_v22, %v118_v22 }
  0xde   :  { %129 = vst.msk [vmem:[%s220_s4 + $0x4] sm:$0xf] %vm127_vm2, %v142_v23 }

// kernel: glm_forward.18
= control target key start
LH: loop header
LB: loop body
LE: loop exit
PB: predicated region body
PF: predicated region fallthrough
CT: control target
= control target key end

     0   :  { %s869_s15 = smov 0   ;;  %s871_s16 = smov 0   ;;  %s946_s0 = inlined_call_operand.vmem [shape: bf16[2,4,8,8], index: 0, kind: input, shape index: {}]   ;;  %s947_s1 = inlined_call_operand.vmem [shape: bf16[2,4,8,8], index: 1, kind: input, shape index: {}]   ;;  %s948_s2 = inlined_call_operand.vmem [shape: bf16[2,4,8,8], index: 2, kind: input, shape index: {}]   ;;  %s949_s3 = inlined_call_operand.vmem [shape: bf16[2,8,8], index: 3, kind: input, shape index: {}]   ;;  %s950_s4 = inlined_call_operand.vmem [shape: bf16[2,4,8,8], index: 4, kind: output, shape index: {}]  }
   0x1   :  { %s873_s17 = smov 0   ;;  %s875_s18 = smov 0  }
   0x2   :  { %s877_s19 = smov 0  }
   0x3 LB: > { %s36_s20 = sadd.s32 1, %s830_s17  ;;  %s40_s21 = sadd.s32 1, %s834_s18  ;;  %s838_s19 = sphi %s877_s19, %s14_s19   ;;  %s834_s18 = sphi %s875_s18, %s954_s18   ;;  %s830_s17 = sphi %s873_s17, %s953_s17   ;;  %s826_s16 = sphi %s871_s16, %s952_s16   ;;  %s822_s15 = sphi %s869_s15, %s951_s15  }
   0x4   : > { %p38_p0 = scmp.ge.s32.totalorder %s36_s20, 4  ;;  %p718_p1 = scmp.ge.s32.totalorder %s838_s19, 1 }
   0x5   : > { %p261_p2 = scmp.lt.s32.totalorder %s838_s19, 9 }
   0x6   : > { %s956_s20 = smov (%p38_p0, %s36_s20), 0  ;;  %s958_s21 = smov (!%p38_p0, %s40_s21), %s834_s18 }
   0x7   : > { %p262_p3 = pnand %p718_p1, %p261_p2  ;;  %p42_p4 = scmp.ge.s32.totalorder %s958_s21, 2 }
   0x8   : > { %p331_p5 = scmp.lt.s32.totalorder (!%p262_p3), %s826_s16, 1  ;;  %p333_p6 = scmp.lt.s32.totalorder (!%p262_p3), %s822_s15, 3 }
   0x9   : > { %s960_s21 = smov (%p42_p4, %s958_s21), 0  ;;  %265 = sbr.rel (%p262_p3) target bundleno = 802 (0x322), region = 36 }
   0xe   : > { %vm393_vm0 = vcmask 64512   ;;  %v840_v0 = vmov 0.0   ;;  %vm841_vm1 = vmmov 0   ;;  %s962_s16 = smov (!%p331_p5, %s826_s16), 1  ;;  %s964_s15 = smov (!%p333_p6, %s822_s15), 3  ;;  %vm390_vm2 = vcmask 7168  }
   0xf   : > { %736 = vmatprep.subr.bf16.mxu0 %v840_v0  ;;  %394 = vst.msk [vmem:[#allocation4] sm:$0xff] %vm393_vm0, %v840_v0  ;;  %738 = vmatprep.mubr.msk.bf16.mxu0 %vm841_vm1, %v840_v0  ;;  %s719_s22 = sshll.u32 %s962_s16, 2  ;;  %v842_v4 = vmov -1e+30   ;;  %v843_v17 = vmov 0   ;;  %vm487_vm3 = vcmask 1043456  }
  0x10   : > { %742 = vmatprep.subr.bf16.mxu1 %v840_v0  ;;  %744 = vmatprep.mubr.msk.bf16.mxu1 %vm841_vm1, %v840_v0  ;;  %s339_s23 = sadd.s32 %s719_s22, %s964_s15  ;;  %391 = vst.msk [vmem:[#allocation2] sm:$0xff] %vm390_vm2, %v842_v4  ;;  %392 = vst.msk [vmem:[#allocation3] sm:$0xff] %vm390_vm2, %v840_v0  ;;  %s373_s7 = scalar_lea.vmem %s949_s3, %s719_s22  ;;  %vm547_vm4 = vcmask 60416  }
  0x11   : > { %s900_s24 = sshll.u32 %s339_s23, 2  ;;  %v445_v5 = vld [vmem:[%s373_s7] sm:$0xf]  ;;  %792 = vset.pattern.permute.xlu0 %v843_v17  ;;  %793 = vset.pattern.permute.xlu1 %v843_v17 }
  0x12   : > { %s352_s27 = scalar_lea.vmem %s947_s1, %s900_s24  ;;  %s341_s30 = scalar_lea.vmem %s946_s0, %s900_s24  ;;  %v446_v6 = vunpack.c.l.bf16 %v445_v5 }
  0x13   : > { %v396_v1 = vld [vmem:[%s352_s27] sm:$0xf]  ;;  %s363_s10 = scalar_lea.vmem %s948_s2, %s900_s24  ;;  %s384_s13 = scalar_lea.vmem %s950_s4, %s900_s24 }
  0x14   : > { %v402_v2 = vsel %vm393_vm0, %v396_v1, 0  ;;  %v395_v3 = vld [vmem:[%s341_s30] sm:$0xf]  ;;  %v448_v7 = vsub.f32 1.0, %v446_v6 }
  0x15   : > { %737 = vmatpush3.bf16.xpose.msra.mxu0 %v402_v2  ;;  %v483_v22 = vld [vmem:[%s363_s10] sm:$0xf] }
  0x16   : > { %v449_v10 = vmul.f32 10000.0, %v448_v7  ;;  %v489_v23 = vsel %vm487_vm3, %v483_v22, 0  ;;  %v475_v38 = vld [vmem:[#allocation4] sm:$0xff] }
  0x17   : > { %v451_v18 = vld [vmem:[#allocation2] sm:$0xff]  ;;  %743 = vmatpush3.bf16.msra.mxu1 %v489_v23  ;;  %v467_v32 = vld [vmem:[#allocation3] sm:$0xff] }
  0x1c   : > { %739 = vmatmul.mubr.msk.bf16.vlgmr.msra.gmra.mxu0 %vm393_vm0, %v395_v3 }
  0xdc   : > { %v438_v8 = vpop.f32.mrf.mxu0 }
  0xdd   : > { %v444_v9 = vmul.f32 0.35355338, %v438_v8 }
  0xde   : > { %v740_v11 = vpop.f32.mrf.mxu0 }
  0xdf   : > { %v447_v12 = vmul.f32 %v446_v6, %v444_v9 }
  0xe0   : > { %v441_v13 = vpop.f32.mrf.mxu0 }
  0xe1   : > { %v450_v14 = vsub.f32 %v447_v12, %v449_v10 }
  0xe2   : > { %v741_v15 = vpop.f32.mrf.mxu0 }
  0xe3   : > { %v452_v16 = vsel %vm393_vm0, %v450_v14, -inf }
  0xe4   : > { %453 = vmax.xlane.f32.xlu0 %v452_v16 }
 0x16d   : > { %v454_v19 = vpop.xlane.xlu0 %453 }
 0x16e   : > { %v455_v20 = vmax.f32 %v451_v18, %v454_v19 }
 0x170   : > { %v456_v21 = vsub.f32 %v451_v18, %v455_v20  ;;  %533 = vst.msk [vmem:[#allocation2] sm:$0xff] %vm390_vm2, %v455_v20  ;;  %461 = vperm.xlu0 %792, %v455_v20  }
 0x172   : > { %v457_v28 = vmul.f32 1.442695, %v456_v21 }
 0x1eb   : > { %v462_v24 = vpop.permute.xlu0 %461 }
 0x1ec   : > { %v464_v25 = vsub.f32 %v450_v14, %v462_v24 }
 0x1ee   : > { %v465_v26 = vmul.f32 1.442695, %v464_v25 }
 0x1f0   : > { %794 = vpow2.f32 %v465_v26 }
 0x1f1   : > { %796 = vpow2.f32 %v457_v28 }
 0x1fd   : > { %v795_v27 = vpop.eup %794 }
 0x1fe   : > { %v469_v29 = vsel %vm393_vm0, %v795_v27, 0.0  ;;  %v482_v30 = vpack.c.bf16 %v795_v27, %v795_v27  ;;  %v797_v31 = vpop.eup %796 }
 0x1ff   : > { %470 = vadd.xlane.f32.xlu1 %v469_v29  ;;  %v468_v33 = vmul.f32 %v797_v31, %v467_v32 }
 0x200   : > { %745 = vmatmul.mubr.msk.bf16.vlgmr.msra.gmra.mxu1 %vm393_vm0, %v482_v30 }
 0x210   : > { %478 = vperm.xlu1 %793, %v797_v31  }
 0x288   : > { %v471_v34 = vpop.xlane.xlu1 %470 }
 0x289   : > { %v472_v35 = vadd.f32 %v471_v34, %v468_v33 }
 0x28b   : > { %474 = vst.msk [vmem:[#allocation3] sm:$0xff] %vm390_vm2, %v472_v35 }
 0x28c   : > { %v479_v39 = vpop.permute.xlu1 %478 }
 0x28d   : > { %v481_v40 = vmul.f32 %v479_v39, %v475_v38 }
 0x292   : > { %v537_v36 = vld [vmem:[#allocation3] sm:$0xff] }
 0x293   : > { %798 = vrcp.f32 %v537_v36 }
 0x2a0   : > { %v799_v37 = vpop.eup %798 }
 0x2a1   : > { %542 = vperm.xlu1 %793, %v799_v37  }
 0x2c0   : > { %v525_v41 = vpop.f32.mrf.mxu1 }
 0x2c1   : > { %v531_v42 = vadd.f32 %v525_v41, %v481_v40 }
 0x2c2   : > { %v746_v43 = vpop.f32.mrf.mxu1 }
 0x2c3   : > { %532 = vst.msk [vmem:[#allocation4] sm:$0xff] %vm393_vm0, %v531_v42 }
 0x2c4   : > { %v528_v44 = vpop.f32.mrf.mxu1 }
 0x2c6   : > { %v747_v45 = vpop.f32.mrf.mxu1 }
 0x2ca   : > { %v539_v46 = vld [vmem:[#allocation4] sm:$0xff] }
 0x31c   : > { %v543_v47 = vpop.permute.xlu1 %542 }
 0x31d   : > { %v545_v48 = vmul.f32 %v543_v47, %v539_v46 }
 0x31f   : > { %v546_v49 = vpack.c.bf16 %v545_v48, %v545_v48 }
 0x321   : > { %548 = vst.msk [vmem:[%s384_s13] sm:$0xf] %vm547_vm4, %v546_v49 }
 0x322 PF: > { %s14_s19 = sadd.s32 1, %s838_s19   ;;  %s951_s15 = smov %s830_s17 }
 0x323   : > { %p11_p7 = scmp.ge.s32.totalorder %s14_s19, 10   ;;  %s952_s16 = smov %s834_s18 }
 0x324   : > { %s953_s17 = smov %s956_s20  ;;  %s954_s18 = smov %s960_s21 }
 0x325   :  { %13 = sbr.rel (!%p11_p7) target bundleno = 3 (0x3), region = 83 }

// kernel: glm_forward.31
= control target key start
LH: loop header
LB: loop body
LE: loop exit
PB: predicated region body
PF: predicated region fallthrough
CT: control target
= control target key end

     0   :  { %v210_v1 = vmov 0.0   ;;  %vm57_vm0 = vcmask 261120   ;;  %vm211_vm1 = vmmov 0   ;;  %vm17_vm2 = vcmask 523264   ;;  %s257_s0 = inlined_call_operand.vmem [shape: bf16[16,32], index: 0, kind: input, shape index: {}]   ;;  %s258_s1 = inlined_call_operand.vmem [shape: bf16[64,32], index: 1, kind: input, shape index: {}]   ;;  %s259_s2 = inlined_call_operand.hbm [shape: bf16[16,64], index: 2, kind: output, shape index: {}]  }
   0x1   :  { %v183_v0 = vld [vmem:[%s258_s1 + $0x18] sm:$0xff]   ;;  %166 = vmatprep.subr.bf16.mxu0 %v210_v1  ;;  %v184_v3 = vld [vmem:[%s258_s1 + $0x10] sm:$0xff]   ;;  %174 = vmatprep.mubr.msk.bf16.mxu0 %vm211_vm1, %v210_v1 }
   0x2   :  { %v71_v2 = vsel %vm57_vm0, %v183_v0, 0 }
   0x3   :  { %167 = vmatpush3.bf16.xpose.msra.mxu0 %v71_v2 }
   0x4   :  { %168 = vmatprep.subr.bf16.mxu0 %v210_v1 }
   0x5   :  { %7 = vsyncpa [#allocation4], 0  ;;  %18 = vst.msk [vmem:[#allocation2] sm:$0xff] %vm17_vm2, %v210_v1  ;;  %v68_v4 = vsel %vm57_vm0, %v184_v3, 0  ;;  %v185_v5 = vld [vmem:[%s258_s1 + $0x8] sm:$0xff]   ;;  %v186_v7 = vld [vmem:[%s258_s1] sm:$0xff]  }
   0x6   :  { %19 = vst.msk [vmem:[#allocation2 + $0x8] sm:$0xff] %vm17_vm2, %v210_v1  ;;  %v65_v6 = vsel %vm57_vm0, %v185_v5, 0  ;;  %v62_v8 = vsel %vm57_vm0, %v186_v7, 0  ;;  %v187_v9 = vld [vmem:[%s257_s0] sm:$0xff]   ;;  %vm132_vm3 = vcmask 519168   ;;  %s212_s1 = smov [#allocation3]  }
   0x7   :  { %s140_s19 = sshll.u32 %s212_s1, 4  ;;  %s141_s19 = int_to_ptr.vmem [resolvable:$true] %s140_s19 }
   0x8   :  { %s188_s0 = scalar_lea.vmem %s141_s19, 128  ;;  %p193_p1 = scmp.lt.s32.totalorder %s141_s19, %s141_s19 }
   0x9   :  { %p189_p0 = scmp.ne.s32.totalorder %s141_s19, %s188_s0  ;;  %p194_p2 = scmp.lt.s32.totalorder %s188_s0, %s188_s0 }
   0xb   :  { %169 = vmatpush3.bf16.xpose.msra.mxu0 %v68_v4  ;;  %p195_p3 = por %p194_p2, %p193_p1 }
   0xc   :  { %170 = vmatprep.subr.bf16.mxu0 %v210_v1  ;;  %v20_v10 = vld [vmem:[#allocation2] sm:$0xff] }
   0xd   :  { %v21_v14 = vld [vmem:[#allocation2 + $0x8] sm:$0xff]  ;;  %p196_p4 = pnand %p195_p3, %p189_p0 }
  0x13   :  { %171 = vmatpush3.bf16.xpose.msra.mxu0 %v65_v6 }
  0x14   :  { %172 = vmatprep.subr.bf16.mxu0 %v210_v1 }
  0x1b   :  { %173 = vmatpush3.bf16.xpose.msra.mxu0 %v62_v8 }
  0x22   :  { %175 = vmatmul.mubr.msk.bf16.vlgmr.msra.gmra.mxu0 %vm57_vm0, %v187_v9 }
  0xe2   :  { %v107_v11 = vpop.f32.mrf.mxu0 }
  0xe3   :  { %v114_v12 = vadd.f32 %v107_v11, %v20_v10 }
  0xe4   :  { %v176_v13 = vpop.f32.mrf.mxu0 }
  0xe5   :  { %117 = vst.msk [vmem:[#allocation2] sm:$0xff] %vm17_vm2, %v114_v12 }
  0xe6   :  { %v110_v15 = vpop.f32.mrf.mxu0 }
  0xe7   :  { %v115_v16 = vadd.f32 %v110_v15, %v21_v14 }
  0xe8   :  { %v177_v17 = vpop.f32.mrf.mxu0 }
  0xe9   :  { %118 = vst.msk [vmem:[#allocation2 + $0x8] sm:$0xff] %vm17_vm2, %v115_v16 }
  0xec   :  { %v122_v18 = vld [vmem:[#allocation2] sm:$0xff] }
  0xed   :  { %v159_v19 = vpack.c.bf16 %v122_v18, %v122_v18 }
  0xef   :  { %133 = vst.msk [vmem:[#allocation3] sm:$0xf] %vm132_vm3, %v159_v19 }
  0xf0   :  { %v123_v20 = vld [vmem:[#allocation2 + $0x8] sm:$0xff] }
  0xf1   :  { %v160_v21 = vpack.c.bf16 %v123_v20, %v123_v20 }
  0xf3   :  { %134 = vst.msk [vmem:[#allocation3 + $0x4] sm:$0xf] %vm132_vm3, %v160_v21 }
  0xf4   :  { %199 = shalt.err (!%p196_p4)
}
  0xf5   :  { %s213_s20 = smov 64   ;;  %s214_s21 = smov 4  }
  0xf6   :  { %146 = dma.vmem_to_hbm [thread:$0]  %s141_s19, 128, %s259_s2, [#allocation4], %s213_s20, %s213_s20, %s214_s21  }
  0xf7   :  { %208 = dma.done.wait [#allocation4], 128  }
  0xf8   :  { %209 = vsyncadd [#allocation4], 4294967168 }
  0xf9   :  { %150 = vsyncpa [#allocation4], 1 }

// kernel: glm_forward.21
= control target key start
LH: loop header
LB: loop body
LE: loop exit
PB: predicated region body
PF: predicated region fallthrough
CT: control target
= control target key end

     0   :  { %v175_v0 = vmov 0.0   ;;  %vm176_vm0 = vmmov 0   ;;  %vm46_vm1 = vcmask 261120   ;;  %s212_s1 = inlined_call_operand.vmem [shape: bf16[32,128], index: 1, kind: input, shape index: {}]   ;;  %s213_s0 = inlined_call_operand.vmem [shape: bf16[16,32], index: 0, kind: input, shape index: {}]   ;;  %s214_s2 = inlined_call_operand.vmem [shape: f32[1,128], index: 2, kind: input, shape index: {}]   ;;  %s215_s3 = inlined_call_operand.vmem [shape: bf16[16,128], index: 3, kind: output, shape index: {}]  }
   0x1   :  { %158 = vmatprep.subr.bf16.mxu0 %v175_v0  ;;  %v168_v1 = vld [vmem:[%s212_s1 + $0x8] sm:$0xff]   ;;  %162 = vmatprep.mubr.msk.bf16.mxu0 %vm176_vm0, %v175_v0  ;;  %v169_v2 = vld [vmem:[%s212_s1] sm:$0xff]  }
   0x2   :  { %159 = vmatpush3.bf16.msra.mxu0 %v168_v1  ;;  %v170_v3 = vld [vmem:[%s213_s0] sm:$0xff]  }
   0x3   :  { %160 = vmatprep.subr.bf16.mxu0 %v175_v0  ;;  %v145_v4 = vld [vmem:[%s214_s2] ss:$0 sm:$0xff] }
   0x6   :  { %161 = vmatpush3.bf16.msra.mxu0 %v169_v2 }
   0x9   :  { %163 = vmatmul.mubr.msk.bf16.vlgmr.msra.gmra.mxu0 %vm46_vm1, %v170_v3 }
  0xc9   :  { %v84_v5 = vpop.f32.mrf.mxu0 }
  0xca   :  { %v107_v6 = vadd.f32 %v145_v4, %v84_v5 }
  0xcb   :  { %v164_v7 = vpop.f32.mrf.mxu0 }
  0xcc   :  { %v113_v8 = vmul.f32 0.044715, %v107_v6  ;;  %v111_v13 = vmul.f32 0.7978846, %v107_v6  ;;  %v109_v24 = vmul.f32 0.5, %v107_v6 }
  0xcd   :  { %v87_v9 = vpop.f32.mrf.mxu0 }
  0xce   :  { %v115_v10 = vmul.f32 %v113_v8, %v107_v6  ;;  %v108_v11 = vadd.f32 %v145_v4, %v87_v9 }
  0xcf   :  { %v165_v12 = vpop.f32.mrf.mxu0 }
  0xd0   :  { %v117_v14 = vadd.f32 1.0, %v115_v10  ;;  %v114_v15 = vmul.f32 0.044715, %v108_v11  ;;  %v112_v18 = vmul.f32 0.7978846, %v108_v11  ;;  %v110_v25 = vmul.f32 0.5, %v108_v11 }
  0xd2   :  { %v119_v16 = vmul.f32 %v117_v14, %v111_v13  ;;  %v116_v17 = vmul.f32 %v114_v15, %v108_v11 }
  0xd4   :  { %171 = vtanh.f32 %v119_v16  ;;  %v118_v19 = vadd.f32 1.0, %v116_v17 }
  0xd6   :  { %v120_v20 = vmul.f32 %v118_v19, %v112_v18 }
  0xd8   :  { %173 = vtanh.f32 %v120_v20 }
  0xe1   :  { %v172_v21 = vpop.eup %171 }
  0xe2   :  { %v123_v22 = vadd.f32 1.0, %v172_v21 }
  0xe4   :  { %v125_v27 = vmul.f32 %v123_v22, %v109_v24 }
  0xe5   :  { %v174_v23 = vpop.eup %173 }
  0xe6   :  { %v124_v26 = vadd.f32 1.0, %v174_v23 }
  0xe8   :  { %v126_v28 = vmul.f32 %v124_v26, %v110_v25 }
  0xea   :  { %v153_v29 = vpack.c.bf16 %v126_v28, %v125_v27 }
  0xec   :  { %154 = vst [vmem:[%s215_s3] sm:$0xff] %v153_v29  }

// kernel: glm_forward.22
= control target key start
LH: loop header
LB: loop body
LE: loop exit
PB: predicated region body
PF: predicated region fallthrough
CT: control target
= control target key end

     0   :  { %vm22_vm0 = vcmask 261120   ;;  %v238_v0 = vmov 0.0   ;;  %vm239_vm1 = vmmov 0   ;;  %vm173_vm2 = vcmask 257024   ;;  %s308_s1 = inlined_call_operand.vmem [shape: bf16[128,32], index: 1, kind: input, shape index: {}]   ;;  %s309_s0 = inlined_call_operand.vmem [shape: bf16[16,128], index: 0, kind: input, shape index: {}]   ;;  %s310_s3 = inlined_call_operand.vmem [shape: bf16[16,32], index: 3, kind: input, shape index: {}]   ;;  %s311_s2 = inlined_call_operand.vmem [shape: f32[1,32], index: 2, kind: input, shape index: {}]   ;;  %s312_s4 = inlined_call_operand.vmem [shape: bf16[16,32], index: 4, kind: output, shape index: {}]  }
   0x1   :  { %207 = vmatprep.subr.bf16.mxu0 %v238_v0  ;;  %v229_v1 = vld [vmem:[%s308_s1 + $0x38] sm:$0xff]   ;;  %223 = vmatprep.mubr.msk.bf16.mxu0 %vm239_vm1, %v238_v0  ;;  %23 = vst.msk [vmem:[#allocation2] sm:$0xff] %vm22_vm0, %v238_v0  ;;  %24 = vst.msk [vmem:[#allocation2 + $0x8] sm:$0xff] %vm22_vm0, %v238_v0  ;;  %v230_v2 = vld [vmem:[%s308_s1 + $0x30] sm:$0xff]  }
   0x2   :  { %208 = vmatpush3.bf16.msra.mxu0 %v229_v1  ;;  %v231_v3 = vld [vmem:[%s308_s1 + $0x28] sm:$0xff]   ;;  %v232_v4 = vld [vmem:[%s308_s1 + $0x20] sm:$0xff]   ;;  %v233_v5 = vld [vmem:[%s308_s1 + $0x18] sm:$0xff]  }
   0x3   :  { %209 = vmatprep.subr.bf16.mxu0 %v238_v0  ;;  %v234_v6 = vld [vmem:[%s308_s1 + $0x10] sm:$0xff]   ;;  %v235_v7 = vld [vmem:[%s308_s1 + $0x8] sm:$0xff]   ;;  %v236_v8 = vld [vmem:[%s308_s1] sm:$0xff]  }
   0x4   :  { %v237_v9 = vld [vmem:[%s309_s0] sm:$0xff]  }
   0x5   :  { %v195_v17 = vld [vmem:[%s310_s3] sm:$0xff]  }
   0x6   :  { %210 = vmatpush3.bf16.msra.mxu0 %v230_v2  ;;  %v189_v19 = vld [vmem:[%s311_s2] ss:$0 sm:$0xff]  ;;  %v196_v20 = vunpack.c.l.bf16 %v195_v17  ;;  %v197_v24 = vunpack.c.h.bf16 %v195_v17 }
   0x7   :  { %211 = vmatprep.subr.bf16.mxu0 %v238_v0 }
   0x8   :  { %v25_v10 = vld [vmem:[#allocation2] sm:$0xff]  ;;  %v26_v14 = vld [vmem:[#allocation2 + $0x8] sm:$0xff] }
   0xa   :  { %212 = vmatpush3.bf16.msra.mxu0 %v231_v3 }
   0xb   :  { %213 = vmatprep.subr.bf16.mxu0 %v238_v0 }
   0xe   :  { %214 = vmatpush3.bf16.msra.mxu0 %v232_v4 }
   0xf   :  { %215 = vmatprep.subr.bf16.mxu0 %v238_v0 }
  0x12   :  { %216 = vmatpush3.bf16.msra.mxu0 %v233_v5 }
  0x13   :  { %217 = vmatprep.subr.bf16.mxu0 %v238_v0 }
  0x16   :  { %218 = vmatpush3.bf16.msra.mxu0 %v234_v6 }
  0x17   :  { %219 = vmatprep.subr.bf16.mxu0 %v238_v0 }
  0x1a   :  { %220 = vmatpush3.bf16.msra.mxu0 %v235_v7 }
  0x1b   :  { %221 = vmatprep.subr.bf16.mxu0 %v238_v0 }
  0x1e   :  { %222 = vmatpush3.bf16.msra.mxu0 %v236_v8 }
  0x21   :  { %224 = vmatmul.mubr.bf16.vlgmr.msra.gmra.mxu0 %v237_v9 }
  0xe1   :  { %v133_v11 = vpop.f32.mrf.mxu0 }
  0xe2   :  { %v140_v12 = vadd.f32 %v133_v11, %v25_v10 }
  0xe3   :  { %v225_v13 = vpop.f32.mrf.mxu0 }
  0xe4   :  { %143 = vst.msk [vmem:[#allocation2] sm:$0xff] %vm22_vm0, %v140_v12 }
  0xe5   :  { %v136_v15 = vpop.f32.mrf.mxu0 }
  0xe6   :  { %v141_v16 = vadd.f32 %v136_v15, %v26_v14 }
  0xe7   :  { %v226_v18 = vpop.f32.mrf.mxu0 }
  0xe8   :  { %144 = vst.msk [vmem:[#allocation2 + $0x8] sm:$0xff] %vm22_vm0, %v141_v16 }
  0xeb   :  { %v148_v21 = vld [vmem:[#allocation2] sm:$0xff] }
  0xec   :  { %v157_v22 = vadd.f32 %v189_v19, %v148_v21 }
  0xee   :  { %v163_v23 = vadd.f32 %v196_v20, %v157_v22 }
  0xef   :  { %v149_v25 = vld [vmem:[#allocation2 + $0x8] sm:$0xff] }
  0xf0   :  { %v192_v26 = vpack.c.bf16 %v163_v23, %v163_v23  ;;  %v158_v27 = vadd.f32 %v189_v19, %v149_v25 }
  0xf2   :  { %174 = vst.msk [vmem:[%s312_s4] sm:$0xf] %vm173_vm2, %v192_v26  ;;  %v164_v28 = vadd.f32 %v197_v24, %v158_v27 }
  0xf4   :  { %v193_v29 = vpack.c.bf16 %v164_v28, %v164_v28 }
  0xf6   :  { %175 = vst.msk [vmem:[%s312_s4 + $0x4] sm:$0xf] %vm173_vm2, %v193_v29 }

</bundles_post_ra>
